<compile_context>
chip_gen: v5e
topology: v5e:2x2
jax: 0.10.0
libtpu: 0.0.40
codegen_flags: <defaults>
</compile_context>

<pallas_src>
import functools
import math

import jax
import jax.numpy as jnp
import numpy as np
from jax import lax
from jax.experimental import pallas as pl
from jax.experimental.pallas import tpu as pltpu

BETA_MIN = 0.05


def _round_up(x, m):
    return (x + m - 1) // m * m


def _vmem_budgets():
    """(vmem_limit_bytes, input budget for tile sizing, max tile) per chip gen."""
    cap = 128 << 20
    try:
        cap = int(getattr(pltpu.get_tpu_info(), "vmem_capacity_bytes", cap))
    except Exception:
        pass
    if cap >= (100 << 20):            # v5e / v6e / v5p: 128 MiB physical VMEM
        return 96 << 20, 64 << 20, 8192
    return 48 << 20, 24 << 20, 8192   # v7x: 64 MiB/TC -> leave Mosaic headroom


def _tile_alignment(n_samples, use_sc):
    """tile_n granularity.

    Ray-major blocks need tile_n % 8 == 0.  The lane-dense solar blocks are
    (tile_n*S/128, 128); for them to be whole (8,128) tiles we additionally
    need tile_n * S % 1024 == 0."""
    if not use_sc:
        return 8
    return math.lcm(8, 1024 // math.gcd(n_samples, 1024))


def _pick_tile_n(n_rays, n_samples, n_ch, n_typ, use_sc, *, align, budget, max_tile):
    """Largest aligned ray tile whose VMEM working set fits the budget.

    Counts double-buffered inputs (lane padding to 128 for the ray-major S/C
    blocks, none for the lane-dense solar blocks) plus elementwise temps."""
    s_pad = _round_up(max(n_samples, 1), 128)
    c_pad = _round_up(max(n_ch, 1), 128)
    in_row = (1 + n_typ) * s_pad + (1 + n_typ) * c_pad        # beta+weights, gt+rgb
    if use_sc:
        in_row += 3 * n_typ * n_samples                        # lane-dense solar
    tmp_row = 2 * s_pad + 2 * c_pad + (2 * n_typ * n_samples if use_sc else 0)
    row_bytes = in_row * 4 * 2 + tmp_row * 4                   # f32; inputs 2x-buffered
    tile = budget // row_bytes
    tile = min(int(tile), int(max_tile), _round_up(n_rays, align))
    return max(align, (tile // align) * align)


def _squeeze_last(x):
    return jnp.squeeze(x, axis=-1) if x.ndim == 3 else x


def _flatten_lane_dense(x, flat_rows):
    """(N, S)[,1] -> (flat_rows, 128), zero-padding the tail (harmless: the
    padded elements contribute 0 to both solar sums)."""
    flat = jnp.ravel(x)
    pad = flat_rows * 128 - flat.shape[0]
    if pad:
        flat = jnp.pad(flat, (0, pad))
    return flat.reshape(flat_rows, 128)


def _satnerf_kernel(*refs, n_rays, tile_n, n_ch, blk_rows, n_flat_rows,
                    need_ray_mask, need_flat_mask, has_fine, use_sc, beta_min):
    """One ray tile -> per-lane partial sums written to a (1, 8, 128) block.

    refs = [gt, beta_coarse] + per-typ([rgb, weights] (+ [sun, transp, wsc]))
           + [out block (1, 8, 128)]
    Row layout per typ t (base = 4*t): [color, logbeta, sc_term2, sc_wsc_sun].
    Narrow terms occupy the first lanes of their row; the rest stays zero, so
    the XLA-side sum over (tiles, lanes) recovers the exact totals.
    """
    n_typ = 2 if has_fine else 1
    per_typ = 2 + (3 if use_sc else 0)
    gt_ref, beta_ref = refs[0], refs[1]
    typ_refs = [refs[2 + t * per_typ: 2 + (t + 1) * per_typ] for t in range(n_typ)]
    out_ref = refs[2 + n_typ * per_typ]

    pid = pl.program_id(0)

    # Per-tile partials start from zero (rows not written below stay zero).
    out_ref[...] = jnp.zeros_like(out_ref)

    gt = gt_ref[...].astype(jnp.float32)         # (tile_n, C)
    beta_c = beta_ref[...].astype(jnp.float32)   # (tile_n, S)

    ray_mask = None
    if need_ray_mask:
        row = pid * tile_n + lax.broadcasted_iota(jnp.int32, (tile_n, 1), 0)
        ray_mask = row < n_rays

    flat_mask = None
    if use_sc and need_flat_mask:
        frow = pid * blk_rows + lax.broadcasted_iota(jnp.int32, (blk_rows, 1), 0)
        flat_mask = frow < n_flat_rows

    def lane_partial(x, mask):
        # Sublane reduce only (pure VPU adds); the cross-lane collapse is done
        # once, outside the kernel, in XLA.  `where` (select) guarantees OOB
        # garbage (NaN/Inf) never reaches the sums.
        if mask is not None:
            x = jnp.where(mask, x, 0.0)
        return jnp.sum(x, axis=0, keepdims=True)          # (1, lanes)

    for t in range(n_typ):
        trefs = typ_refs[t]
        base = 4 * t
        rgb = trefs[0][...].astype(jnp.float32)            # (tile_n, C)
        w = trefs[1][...].astype(jnp.float32)              # (tile_n, S)

        # beta = sum_s(weights * beta_coarse) + beta_min -> (tile_n, 1)
        beta = jnp.sum(w * beta_c, axis=-1, keepdims=True) + beta_min
        # Exact divide (approx=False); approx=True would cost ~2^-12 rel-err.
        inv_2b2 = pl.reciprocal(2.0 * beta * beta)

        out_ref[0, base + 0:base + 1, 0:n_ch] = lane_partial(
            (rgb - gt) ** 2 * inv_2b2, ray_mask)           # (1, C)
        out_ref[0, base + 1:base + 2, 0:1] = lane_partial(
            jnp.log(beta), ray_mask)                       # (1, 1)

        if use_sc:
            sun = trefs[2][...].astype(jnp.float32)        # (blk_rows, 128)
            transp = trefs[3][...].astype(jnp.float32)
            wsc = trefs[4][...].astype(jnp.float32)
            out_ref[0, base + 2:base + 3, :] = lane_partial(
                (transp - sun) ** 2, flat_mask)            # (1, 128)
            out_ref[0, base + 3:base + 4, :] = lane_partial(
                wsc * sun, flat_mask)                      # (1, 128)


def sat_nerf_loss(inputs, targets, lambda_sc=0.0, tile_n=None):
    """JAX/Pallas equivalent of SatNerfLoss(lambda_sc).forward(inputs, targets)."""
    has_fine = 'rgb_fine' in inputs
    use_sc = float(lambda_sc) > 0.0
    typs = ['coarse'] + (['fine'] if has_fine else [])
    n_typ = len(typs)

    beta_coarse = _squeeze_last(inputs['beta_coarse'])          # (N, S)
    n_rays, n_samples = int(beta_coarse.shape[0]), int(beta_coarse.shape[1])
    n_ch = int(targets.shape[-1])

    vmem_limit, vmem_budget, max_tile = _vmem_budgets()
    align = _tile_alignment(n_samples, use_sc)

    if tile_n is None:
        tile_n = _pick_tile_n(n_rays, n_samples, n_ch, n_typ, use_sc,
                              align=align, budget=vmem_budget, max_tile=max_tile)
    else:
        tile_n = max(align, _round_up(int(tile_n), align))
    if tile_n >= n_rays:
        tile_n = n_rays                      # single full-extent tile
    num_tiles = -(-n_rays // tile_n)

    s_spec = pl.BlockSpec((tile_n, n_samples), lambda i: (i, 0))
    rgb_spec = pl.BlockSpec((tile_n, n_ch), lambda i: (i, 0))

    flat_rows = blk_rows = 0
    need_flat_mask = False
    if use_sc:
        flat_rows = -(-(n_rays * n_samples) // 128)
        if num_tiles == 1:
            blk_rows = flat_rows
        else:
            assert (tile_n * n_samples) % 128 == 0
            blk_rows = (tile_n * n_samples) // 128
        need_flat_mask = num_tiles * blk_rows > flat_rows
        sc_spec = pl.BlockSpec((blk_rows, 128), lambda i: (i, 0))
    need_ray_mask = num_tiles * tile_n > n_rays

    arrays = [targets, beta_coarse]
    in_specs = [rgb_spec, s_spec]
    for typ in typs:
        arrays += [inputs[f'rgb_{typ}'], inputs[f'weights_{typ}']]
        in_specs += [rgb_spec, s_spec]
        if use_sc:
            arrays += [
                _flatten_lane_dense(_squeeze_last(inputs[f'sun_sc_{typ}']), flat_rows),
                _flatten_lane_dense(inputs[f'transparency_sc_{typ}'], flat_rows),
                _flatten_lane_dense(inputs[f'weights_sc_{typ}'], flat_rows),
            ]
            in_specs += [sc_spec] * 3

    kernel = functools.partial(
        _satnerf_kernel, n_rays=n_rays, tile_n=int(tile_n), n_ch=n_ch,
        blk_rows=int(blk_rows), n_flat_rows=int(flat_rows),
        need_ray_mask=bool(need_ray_mask), need_flat_mask=bool(need_flat_mask),
        has_fine=has_fine, use_sc=use_sc, beta_min=BETA_MIN)

    in_bytes = sum(int(a.size) * a.dtype.itemsize for a in arrays)
    out_bytes = num_tiles * 8 * 128 * 4
    cost = pl.CostEstimate(
        flops=int(n_typ * (8 * n_rays * n_samples + 6 * n_rays * n_ch)),
        transcendentals=int(2 * n_typ * n_rays),
        bytes_accessed=int(in_bytes + out_bytes))

    partials = pl.pallas_call(
        kernel,
        out_shape=jax.ShapeDtypeStruct((num_tiles, 8, 128), jnp.float32),
        grid=(num_tiles,),
        in_specs=in_specs,
        out_specs=pl.BlockSpec((1, 8, 128), lambda i: (i, 0, 0)),
        compiler_params=pltpu.CompilerParams(
            dimension_semantics=("parallel",),   # per-tile partials -> both TCs on v7x
            vmem_limit_bytes=int(vmem_limit)),
        cost_estimate=cost,
    )(*arrays)

    # Tiny finalize in XLA: collapse tiles+lanes once, then scale.
    sums = jnp.sum(partials, axis=(0, 2))        # (8,)
    inv_n = 1.0 / float(n_rays)
    loss_dict = {}
    for t, typ in enumerate(typs):
        b = 4 * t
        loss_dict[f'{typ}_color'] = sums[b + 0] * (inv_n / float(n_ch))
        loss_dict[f'{typ}_logbeta'] = (3.0 + sums[b + 1] * inv_n) / 2.0
        if use_sc:
            sc = float(lambda_sc) / 3.0
            loss_dict[f'{typ}_sc_term2'] = sc * sums[b + 2] * inv_n
            loss_dict[f'{typ}_sc_term3'] = sc * (1.0 - sums[b + 3] * inv_n)
    loss = sum(loss_dict.values())
    return loss, loss_dict


# ---------------------- pure-JAX reference (for verification) ----------------
def _ref_loss(inputs, targets, lambda_sc):
    loss_dict = {}

    def uncertainty(typ):
        beta = jnp.sum(inputs[f'weights_{typ}'][..., None] * inputs['beta_coarse'],
                       axis=-2) + BETA_MIN
        loss_dict[f'{typ}_color'] = jnp.mean(
            (inputs[f'rgb_{typ}'] - targets) ** 2 / (2 * beta ** 2))
        loss_dict[f'{typ}_logbeta'] = (3 + jnp.mean(jnp.log(beta))) / 2

    def solar(typ):
        sun = jnp.squeeze(inputs[f'sun_sc_{typ}'])
        term2 = jnp.sum((inputs[f'transparency_sc_{typ}'] - sun) ** 2, -1)
        term3 = 1 - jnp.sum(inputs[f'weights_sc_{typ}'] * sun, -1)
        loss_dict[f'{typ}_sc_term2'] = lambda_sc / 3.0 * jnp.mean(term2)
        loss_dict[f'{typ}_sc_term3'] = lambda_sc / 3.0 * jnp.mean(term3)

    uncertainty('coarse')
    if lambda_sc > 0:
        solar('coarse')
    if 'rgb_fine' in inputs:
        uncertainty('fine')
        if lambda_sc > 0:
            solar('fine')
    return sum(loss_dict.values()), loss_dict


def _check(loss, loss_dict, ref_loss, ref_dict):
    np.testing.assert_allclose(np.asarray(loss), np.asarray(ref_loss),
                               rtol=1e-5, atol=1e-6)
    for k in ref_dict:
        np.testing.assert_allclose(np.asarray(loss_dict[k]),
                                   np.asarray(ref_dict[k]),
                                   rtol=1e-5, atol=1e-6)


def _make_inputs(key, n, s, with_fine=True):
    ks = jax.random.split(key, 12)
    inputs = {
        'rgb_coarse': jax.random.uniform(ks[0], (n, 3), jnp.float32),
        'weights_coarse': jax.random.uniform(ks[2], (n, s), jnp.float32),
        'beta_coarse': jax.random.uniform(ks[4], (n, s, 1), jnp.float32) + 0.1,
        'sun_sc_coarse': jax.random.uniform(ks[5], (n, s, 1), jnp.float32),
        'transparency_sc_coarse': jax.random.uniform(ks[7], (n, s), jnp.float32),
        'weights_sc_coarse': jax.random.uniform(ks[9], (n, s), jnp.float32),
    }
    if with_fine:
        inputs.update({
            'rgb_fine': jax.random.uniform(ks[1], (n, 3), jnp.float32),
            'weights_fine': jax.random.uniform(ks[3], (n, s), jnp.float32),
            'sun_sc_fine': jax.random.uniform(ks[6], (n, s, 1), jnp.float32),
            'transparency_sc_fine': jax.random.uniform(ks[8], (n, s), jnp.float32),
            'weights_sc_fine': jax.random.uniform(ks[10], (n, s), jnp.float32),
        })
    targets = jax.random.uniform(ks[11], (n, 3), jnp.float32)
    return inputs, targets


if __name__ == "__main__":
    key = jax.random.PRNGKey(0)
    k_a, k_b = jax.random.split(key)
    N, S = 200, 16          # rays, samples per ray (small demo shapes)
    lambda_sc = 0.05

    inputs, targets = _make_inputs(k_a, N, S, with_fine=True)
    ref_loss, ref_ld = _ref_loss(inputs, targets, lambda_sc)

    # 1) auto tile (single full-extent tile), coarse+fine, solar terms on
    loss, ld = sat_nerf_loss(inputs, targets, lambda_sc=lambda_sc)
    loss = jax.block_until_ready(loss)
    _check(loss, ld, ref_loss, ref_ld)

    # 2) forced small tile -> 4-step grid, partial (masked) last ray/solar tile
    loss2, ld2 = sat_nerf_loss(inputs, targets, lambda_sc=lambda_sc, tile_n=64)
    loss2 = jax.block_until_ready(loss2)
    _check(loss2, ld2, ref_loss, ref_ld)

    # 3) lambda_sc == 0, coarse only (no solar arrays are DMA'd at all)
    inputs_coarse = {k: v for k, v in inputs.items() if 'fine' not in k}
    loss3, ld3 = sat_nerf_loss(inputs_coarse, targets, lambda_sc=0.0)
    loss3 = jax.block_until_ready(loss3)
    ref_loss3, ref_ld3 = _ref_loss(inputs_coarse, targets, 0.0)
    _check(loss3, ld3, ref_loss3, ref_ld3)

    # 4) N*S not a multiple of 128 -> zero-padded lane-dense solar tail + masks
    inputs4, targets4 = _make_inputs(k_b, 100, S, with_fine=True)
    loss4, ld4 = sat_nerf_loss(inputs4, targets4, lambda_sc=lambda_sc, tile_n=64)
    loss4 = jax.block_until_ready(loss4)
    ref_loss4, ref_ld4 = _ref_loss(inputs4, targets4, lambda_sc)
    _check(loss4, ld4, ref_loss4, ref_ld4)

    print("KERNEL_OK")
</pallas_src>

<mosaic_0001>
module attributes {stable_mosaic.version = 11 : i64} {
  func.func @_satnerf_kernel(%arg0: i32, %arg1: memref<200x3xf32, #tpu.memory_space<vmem>>, %arg2: memref<200x16xf32, #tpu.memory_space<vmem>>, %arg3: memref<200x3xf32, #tpu.memory_space<vmem>>, %arg4: memref<200x16xf32, #tpu.memory_space<vmem>>, %arg5: memref<25x128xf32, #tpu.memory_space<vmem>>, %arg6: memref<25x128xf32, #tpu.memory_space<vmem>>, %arg7: memref<25x128xf32, #tpu.memory_space<vmem>>, %arg8: memref<200x3xf32, #tpu.memory_space<vmem>>, %arg9: memref<200x16xf32, #tpu.memory_space<vmem>>, %arg10: memref<25x128xf32, #tpu.memory_space<vmem>>, %arg11: memref<25x128xf32, #tpu.memory_space<vmem>>, %arg12: memref<25x128xf32, #tpu.memory_space<vmem>>, %arg13: memref<1x8x128xf32, #tpu.memory_space<vmem>>) attributes {dimension_semantics = [#tpu.dimension_semantics<parallel>], iteration_bounds = array<i64: 1>, scalar_prefetch = 0 : i64, scratch_operands = 0 : i64, tpu.core_type = #tpu.core_type<tc>, window_params = [{transform_indices = @transform_0, window_bounds = array<i64: 200, 3>}, {transform_indices = @transform_1, window_bounds = array<i64: 200, 16>}, {transform_indices = @transform_2, window_bounds = array<i64: 200, 3>}, {transform_indices = @transform_3, window_bounds = array<i64: 200, 16>}, {transform_indices = @transform_4, window_bounds = array<i64: 25, 128>}, {transform_indices = @transform_5, window_bounds = array<i64: 25, 128>}, {transform_indices = @transform_6, window_bounds = array<i64: 25, 128>}, {transform_indices = @transform_7, window_bounds = array<i64: 200, 3>}, {transform_indices = @transform_8, window_bounds = array<i64: 200, 16>}, {transform_indices = @transform_9, window_bounds = array<i64: 25, 128>}, {transform_indices = @transform_10, window_bounds = array<i64: 25, 128>}, {transform_indices = @transform_11, window_bounds = array<i64: 25, 128>}, {transform_indices = @transform_12, window_bounds = array<i64: 1, 8, 128>}]} {
    %cst = arith.constant 0.000000e+00 : f32
    %0 = vector.broadcast %cst : f32 to vector<1x8x128xf32>
    %c0 = arith.constant 0 : index
    %c0_0 = arith.constant 0 : index
    %c0_1 = arith.constant 0 : index
    %1 = vector.load %arg13[%c0, %c0_0, %c0_1] : memref<1x8x128xf32, #tpu.memory_space<vmem>>, vector<1x8x128xf32>
    tpu.vector_store %arg13[%c0, %c0_0, %c0_1], %0 {strides = array<i32>} : memref<1x8x128xf32, #tpu.memory_space<vmem>>, vector<1x8x128xf32>,
    %c0_2 = arith.constant 0 : index
    %c0_3 = arith.constant 0 : index
    %2 = vector.load %arg1[%c0_2, %c0_3] : memref<200x3xf32, #tpu.memory_space<vmem>>, vector<200x3xf32>
    %c0_4 = arith.constant 0 : index
    %c0_5 = arith.constant 0 : index
    %3 = vector.load %arg2[%c0_4, %c0_5] : memref<200x16xf32, #tpu.memory_space<vmem>>, vector<200x16xf32>
    %c0_6 = arith.constant 0 : index
    %c0_7 = arith.constant 0 : index
    %4 = vector.load %arg3[%c0_6, %c0_7] : memref<200x3xf32, #tpu.memory_space<vmem>>, vector<200x3xf32>
    %c0_8 = arith.constant 0 : index
    %c0_9 = arith.constant 0 : index
    %5 = vector.load %arg4[%c0_8, %c0_9] : memref<200x16xf32, #tpu.memory_space<vmem>>, vector<200x16xf32>
    %6 = arith.mulf %5, %3 : vector<200x16xf32>
    %cst_10 = arith.constant dense<0.000000e+00> : vector<200xf32>
    %7 = vector.multi_reduction <add>, %6, %cst_10 [1] : vector<200x16xf32> to vector<200xf32>
    %8 = vector.shape_cast %7 : vector<200xf32> to vector<200x1xf32>
    %cst_11 = arith.constant 5.000000e-02 : f32
    %9 = vector.broadcast %cst_11 : f32 to vector<200x1xf32>
    %10 = arith.addf %8, %9 : vector<200x1xf32>
    %cst_12 = arith.constant 2.000000e+00 : f32
    %11 = vector.broadcast %cst_12 : f32 to vector<200x1xf32>
    %12 = arith.mulf %11, %10 : vector<200x1xf32>
    %13 = arith.mulf %12, %10 : vector<200x1xf32>
    %14 = tpu.reciprocal %13 : vector<200x1xf32> -> vector<200x1xf32>
    %15 = arith.subf %4, %2 : vector<200x3xf32>
    %16 = arith.mulf %15, %15 : vector<200x3xf32>
    %17 = vector.broadcast %14 : vector<200x1xf32> to vector<200x3xf32>
    %18 = arith.mulf %16, %17 : vector<200x3xf32>
    %cst_13 = arith.constant dense<0.000000e+00> : vector<3xf32>
    %19 = vector.multi_reduction <add>, %18, %cst_13 [0] : vector<200x3xf32> to vector<3xf32>
    %20 = vector.shape_cast %19 : vector<3xf32> to vector<1x3xf32>
    %c0_14 = arith.constant 0 : index
    %c0_15 = arith.constant 0 : index
    %c0_16 = arith.constant 0 : index
    %21 = vector.load %arg13[%c0_14, %c0_15, %c0_16] : memref<1x8x128xf32, #tpu.memory_space<vmem>>, vector<1x1x3xf32>
    %22 = vector.shape_cast %21 : vector<1x1x3xf32> to vector<1x3xf32>
    %23 = vector.shape_cast %20 : vector<1x3xf32> to vector<1x1x3xf32>
    tpu.vector_store %arg13[%c0_14, %c0_15, %c0_16], %23 {strides = array<i32>} : memref<1x8x128xf32, #tpu.memory_space<vmem>>, vector<1x1x3xf32>,
    %24 = math.log %10 : vector<200x1xf32>
    %cst_17 = arith.constant dense<0.000000e+00> : vector<1xf32>
    %25 = vector.multi_reduction <add>, %24, %cst_17 [0] : vector<200x1xf32> to vector<1xf32>
    %26 = vector.shape_cast %25 : vector<1xf32> to vector<1x1xf32>
    %c0_18 = arith.constant 0 : index
    %c1 = arith.constant 1 : index
    %c0_19 = arith.constant 0 : index
    %27 = vector.load %arg13[%c0_18, %c1, %c0_19] : memref<1x8x128xf32, #tpu.memory_space<vmem>>, vector<1x1x1xf32>
    %28 = vector.shape_cast %27 : vector<1x1x1xf32> to vector<1x1xf32>
    %29 = vector.shape_cast %26 : vector<1x1xf32> to vector<1x1x1xf32>
    tpu.vector_store %arg13[%c0_18, %c1, %c0_19], %29 {strides = array<i32>} : memref<1x8x128xf32, #tpu.memory_space<vmem>>, vector<1x1x1xf32>,
    %c0_20 = arith.constant 0 : index
    %c0_21 = arith.constant 0 : index
    %30 = vector.load %arg5[%c0_20, %c0_21] : memref<25x128xf32, #tpu.memory_space<vmem>>, vector<25x128xf32>
    %c0_22 = arith.constant 0 : index
    %c0_23 = arith.constant 0 : index
    %31 = vector.load %arg6[%c0_22, %c0_23] : memref<25x128xf32, #tpu.memory_space<vmem>>, vector<25x128xf32>
    %c0_24 = arith.constant 0 : index
    %c0_25 = arith.constant 0 : index
    %32 = vector.load %arg7[%c0_24, %c0_25] : memref<25x128xf32, #tpu.memory_space<vmem>>, vector<25x128xf32>
    %33 = arith.subf %31, %30 : vector<25x128xf32>
    %34 = arith.mulf %33, %33 : vector<25x128xf32>
    %cst_26 = arith.constant dense<0.000000e+00> : vector<128xf32>
    %35 = vector.multi_reduction <add>, %34, %cst_26 [0] : vector<25x128xf32> to vector<128xf32>
    %36 = vector.shape_cast %35 : vector<128xf32> to vector<1x128xf32>
    %c0_27 = arith.constant 0 : index
    %c2 = arith.constant 2 : index
    %c0_28 = arith.constant 0 : index
    %37 = vector.load %arg13[%c0_27, %c2, %c0_28] : memref<1x8x128xf32, #tpu.memory_space<vmem>>, vector<1x1x128xf32>
    %38 = vector.shape_cast %37 : vector<1x1x128xf32> to vector<1x128xf32>
    %39 = vector.shape_cast %36 : vector<1x128xf32> to vector<1x1x128xf32>
    tpu.vector_store %arg13[%c0_27, %c2, %c0_28], %39 {strides = array<i32>} : memref<1x8x128xf32, #tpu.memory_space<vmem>>, vector<1x1x128xf32>,
    %40 = arith.mulf %32, %30 : vector<25x128xf32>
    %cst_29 = arith.constant dense<0.000000e+00> : vector<128xf32>
    %41 = vector.multi_reduction <add>, %40, %cst_29 [0] : vector<25x128xf32> to vector<128xf32>
    %42 = vector.shape_cast %41 : vector<128xf32> to vector<1x128xf32>
    %c0_30 = arith.constant 0 : index
    %c3 = arith.constant 3 : index
    %c0_31 = arith.constant 0 : index
    %43 = vector.load %arg13[%c0_30, %c3, %c0_31] : memref<1x8x128xf32, #tpu.memory_space<vmem>>, vector<1x1x128xf32>
    %44 = vector.shape_cast %43 : vector<1x1x128xf32> to vector<1x128xf32>
    %45 = vector.shape_cast %42 : vector<1x128xf32> to vector<1x1x128xf32>
    tpu.vector_store %arg13[%c0_30, %c3, %c0_31], %45 {strides = array<i32>} : memref<1x8x128xf32, #tpu.memory_space<vmem>>, vector<1x1x128xf32>,
    %c0_32 = arith.constant 0 : index
    %c0_33 = arith.constant 0 : index
    %46 = vector.load %arg8[%c0_32, %c0_33] : memref<200x3xf32, #tpu.memory_space<vmem>>, vector<200x3xf32>
    %c0_34 = arith.constant 0 : index
    %c0_35 = arith.constant 0 : index
    %47 = vector.load %arg9[%c0_34, %c0_35] : memref<200x16xf32, #tpu.memory_space<vmem>>, vector<200x16xf32>
    %48 = arith.mulf %47, %3 : vector<200x16xf32>
    %cst_36 = arith.constant dense<0.000000e+00> : vector<200xf32>
    %49 = vector.multi_reduction <add>, %48, %cst_36 [1] : vector<200x16xf32> to vector<200xf32>
    %50 = vector.shape_cast %49 : vector<200xf32> to vector<200x1xf32>
    %cst_37 = arith.constant 5.000000e-02 : f32
    %51 = vector.broadcast %cst_37 : f32 to vector<200x1xf32>
    %52 = arith.addf %50, %51 : vector<200x1xf32>
    %cst_38 = arith.constant 2.000000e+00 : f32
    %53 = vector.broadcast %cst_38 : f32 to vector<200x1xf32>
    %54 = arith.mulf %53, %52 : vector<200x1xf32>
    %55 = arith.mulf %54, %52 : vector<200x1xf32>
    %56 = tpu.reciprocal %55 : vector<200x1xf32> -> vector<200x1xf32>
    %57 = arith.subf %46, %2 : vector<200x3xf32>
    %58 = arith.mulf %57, %57 : vector<200x3xf32>
    %59 = vector.broadcast %56 : vector<200x1xf32> to vector<200x3xf32>
    %60 = arith.mulf %58, %59 : vector<200x3xf32>
    %cst_39 = arith.constant dense<0.000000e+00> : vector<3xf32>
    %61 = vector.multi_reduction <add>, %60, %cst_39 [0] : vector<200x3xf32> to vector<3xf32>
    %62 = vector.shape_cast %61 : vector<3xf32> to vector<1x3xf32>
    %c0_40 = arith.constant 0 : index
    %c4 = arith.constant 4 : index
    %c0_41 = arith.constant 0 : index
    %63 = vector.load %arg13[%c0_40, %c4, %c0_41] : memref<1x8x128xf32, #tpu.memory_space<vmem>>, vector<1x1x3xf32>
    %64 = vector.shape_cast %63 : vector<1x1x3xf32> to vector<1x3xf32>
    %65 = vector.shape_cast %62 : vector<1x3xf32> to vector<1x1x3xf32>
    tpu.vector_store %arg13[%c0_40, %c4, %c0_41], %65 {strides = array<i32>} : memref<1x8x128xf32, #tpu.memory_space<vmem>>, vector<1x1x3xf32>,
    %66 = math.log %52 : vector<200x1xf32>
    %cst_42 = arith.constant dense<0.000000e+00> : vector<1xf32>
    %67 = vector.multi_reduction <add>, %66, %cst_42 [0] : vector<200x1xf32> to vector<1xf32>
    %68 = vector.shape_cast %67 : vector<1xf32> to vector<1x1xf32>
    %c0_43 = arith.constant 0 : index
    %c5 = arith.constant 5 : index
    %c0_44 = arith.constant 0 : index
    %69 = vector.load %arg13[%c0_43, %c5, %c0_44] : memref<1x8x128xf32, #tpu.memory_space<vmem>>, vector<1x1x1xf32>
    %70 = vector.shape_cast %69 : vector<1x1x1xf32> to vector<1x1xf32>
    %71 = vector.shape_cast %68 : vector<1x1xf32> to vector<1x1x1xf32>
    tpu.vector_store %arg13[%c0_43, %c5, %c0_44], %71 {strides = array<i32>} : memref<1x8x128xf32, #tpu.memory_space<vmem>>, vector<1x1x1xf32>,
    %c0_45 = arith.constant 0 : index
    %c0_46 = arith.constant 0 : index
    %72 = vector.load %arg10[%c0_45, %c0_46] : memref<25x128xf32, #tpu.memory_space<vmem>>, vector<25x128xf32>
    %c0_47 = arith.constant 0 : index
    %c0_48 = arith.constant 0 : index
    %73 = vector.load %arg11[%c0_47, %c0_48] : memref<25x128xf32, #tpu.memory_space<vmem>>, vector<25x128xf32>
    %c0_49 = arith.constant 0 : index
    %c0_50 = arith.constant 0 : index
    %74 = vector.load %arg12[%c0_49, %c0_50] : memref<25x128xf32, #tpu.memory_space<vmem>>, vector<25x128xf32>
    %75 = arith.subf %73, %72 : vector<25x128xf32>
    %76 = arith.mulf %75, %75 : vector<25x128xf32>
    %cst_51 = arith.constant dense<0.000000e+00> : vector<128xf32>
    %77 = vector.multi_reduction <add>, %76, %cst_51 [0] : vector<25x128xf32> to vector<128xf32>
    %78 = vector.shape_cast %77 : vector<128xf32> to vector<1x128xf32>
    %c0_52 = arith.constant 0 : index
    %c6 = arith.constant 6 : index
    %c0_53 = arith.constant 0 : index
    %79 = vector.load %arg13[%c0_52, %c6, %c0_53] : memref<1x8x128xf32, #tpu.memory_space<vmem>>, vector<1x1x128xf32>
    %80 = vector.shape_cast %79 : vector<1x1x128xf32> to vector<1x128xf32>
    %81 = vector.shape_cast %78 : vector<1x128xf32> to vector<1x1x128xf32>
    tpu.vector_store %arg13[%c0_52, %c6, %c0_53], %81 {strides = array<i32>} : memref<1x8x128xf32, #tpu.memory_space<vmem>>, vector<1x1x128xf32>,
    %82 = arith.mulf %74, %72 : vector<25x128xf32>
    %cst_54 = arith.constant dense<0.000000e+00> : vector<128xf32>
    %83 = vector.multi_reduction <add>, %82, %cst_54 [0] : vector<25x128xf32> to vector<128xf32>
    %84 = vector.shape_cast %83 : vector<128xf32> to vector<1x128xf32>
    %c0_55 = arith.constant 0 : index
    %c7 = arith.constant 7 : index
    %c0_56 = arith.constant 0 : index
    %85 = vector.load %arg13[%c0_55, %c7, %c0_56] : memref<1x8x128xf32, #tpu.memory_space<vmem>>, vector<1x1x128xf32>
    %86 = vector.shape_cast %85 : vector<1x1x128xf32> to vector<1x128xf32>
    %87 = vector.shape_cast %84 : vector<1x128xf32> to vector<1x1x128xf32>
    tpu.vector_store %arg13[%c0_55, %c7, %c0_56], %87 {strides = array<i32>} : memref<1x8x128xf32, #tpu.memory_space<vmem>>, vector<1x1x128xf32>,
    return
  }
  func.func @transform_0(%arg0: i32) -> (i32, i32) {
    %c0_i32 = arith.constant 0 : i32
    %c0_i32_0 = arith.constant 0 : i32
    return %arg0, %c0_i32 : i32, i32
  }
  func.func @transform_1(%arg0: i32) -> (i32, i32) {
    %c0_i32 = arith.constant 0 : i32
    %c0_i32_0 = arith.constant 0 : i32
    return %arg0, %c0_i32 : i32, i32
  }
  func.func @transform_2(%arg0: i32) -> (i32, i32) {
    %c0_i32 = arith.constant 0 : i32
    %c0_i32_0 = arith.constant 0 : i32
    return %arg0, %c0_i32 : i32, i32
  }
  func.func @transform_3(%arg0: i32) -> (i32, i32) {
    %c0_i32 = arith.constant 0 : i32
    %c0_i32_0 = arith.constant 0 : i32
    return %arg0, %c0_i32 : i32, i32
  }
  func.func @transform_4(%arg0: i32) -> (i32, i32) {
    %c0_i32 = arith.constant 0 : i32
    %c0_i32_0 = arith.constant 0 : i32
    return %arg0, %c0_i32 : i32, i32
  }
  func.func @transform_5(%arg0: i32) -> (i32, i32) {
    %c0_i32 = arith.constant 0 : i32
    %c0_i32_0 = arith.constant 0 : i32
    return %arg0, %c0_i32 : i32, i32
  }
  func.func @transform_6(%arg0: i32) -> (i32, i32) {
    %c0_i32 = arith.constant 0 : i32
    %c0_i32_0 = arith.constant 0 : i32
    return %arg0, %c0_i32 : i32, i32
  }
  func.func @transform_7(%arg0: i32) -> (i32, i32) {
    %c0_i32 = arith.constant 0 : i32
    %c0_i32_0 = arith.constant 0 : i32
    return %arg0, %c0_i32 : i32, i32
  }
  func.func @transform_8(%arg0: i32) -> (i32, i32) {
    %c0_i32 = arith.constant 0 : i32
    %c0_i32_0 = arith.constant 0 : i32
    return %arg0, %c0_i32 : i32, i32
  }
  func.func @transform_9(%arg0: i32) -> (i32, i32) {
    %c0_i32 = arith.constant 0 : i32
    %c0_i32_0 = arith.constant 0 : i32
    return %arg0, %c0_i32 : i32, i32
  }
  func.func @transform_10(%arg0: i32) -> (i32, i32) {
    %c0_i32 = arith.constant 0 : i32
    %c0_i32_0 = arith.constant 0 : i32
    return %arg0, %c0_i32 : i32, i32
  }
  func.func @transform_11(%arg0: i32) -> (i32, i32) {
    %c0_i32 = arith.constant 0 : i32
    %c0_i32_0 = arith.constant 0 : i32
    return %arg0, %c0_i32 : i32, i32
  }
  func.func @transform_12(%arg0: i32) -> (i32, i32, i32) {
    %c0_i32 = arith.constant 0 : i32
    %c0_i32_0 = arith.constant 0 : i32
    %c0_i32_1 = arith.constant 0 : i32
    return %arg0, %c0_i32, %c0_i32_0 : i32, i32, i32
  }
}

</mosaic_0001>

<bundles_post_ra>
// kernel: tpu_custom_call.1
= control target key start
LH: loop header
LB: loop body
LE: loop exit
PB: predicated region body
PF: predicated region fallthrough
CT: control target
= control target key end

     0   :  { %vm168_vm0 = vcmask 130048   ;;  %s4042_s0 = inlined_call_operand.vmem [shape: f32[200,3], index: 0, kind: input, shape index: {}]   ;;  %s4043_s1 = inlined_call_operand.vmem [shape: f32[200,16], index: 1, kind: input, shape index: {}]   ;;  %s4044_s2 = inlined_call_operand.vmem [shape: f32[200,3], index: 2, kind: input, shape index: {}]   ;;  %s4045_s3 = inlined_call_operand.vmem [shape: f32[200,16], index: 3, kind: input, shape index: {}]   ;;  %s4046_s4 = inlined_call_operand.vmem [shape: f32[25,128], index: 4, kind: input, shape index: {}]   ;;  %s4047_s5 = inlined_call_operand.vmem [shape: f32[25,128], index: 5, kind: input, shape index: {}]   ;;  %s4048_s6 = inlined_call_operand.vmem [shape: f32[25,128], index: 6, kind: input, shape index: {}]   ;;  %s4049_s7 = inlined_call_operand.vmem [shape: f32[200,3], index: 7, kind: input, shape index: {}]   ;;  %s4050_s8 = inlined_call_operand.vmem [shape: f32[200,16], index: 8, kind: input, shape index: {}]   ;;  %s4051_s9 = inlined_call_operand.vmem [shape: f32[25,128], index: 9, kind: input, shape index: {}]   ;;  %s4052_s10 = inlined_call_operand.vmem [shape: f32[25,128], index: 10, kind: input, shape index: {}]   ;;  %s4053_s11 = inlined_call_operand.vmem [shape: f32[25,128], index: 11, kind: input, shape index: {}]   ;;  %s4054_s12 = inlined_call_operand.hbm [shape: f32[1,8,128], index: 12, kind: output, shape index: {}]  }
   0x1   :  { %v2078_v0 = vld [vmem:[%s4043_s1 + $0x20] sm:$0xff]  ;;  %v70_v2 = vld [vmem:[%s4043_s1 + $0x10] sm:$0xff]  ;;  %v73_v9 = vld [vmem:[%s4043_s1 + $0x28] sm:$0xff] }
   0x2   :  { %v122_v1 = vld [vmem:[%s4045_s3 + $0x20] sm:$0xff]  ;;  %v120_v4 = vld [vmem:[%s4045_s3 + $0x10] sm:$0xff]  ;;  %v123_v10 = vld [vmem:[%s4045_s3 + $0x28] sm:$0xff] }
   0x3   :  { %v147_v3 = vmul.f32 %v122_v1, %v2078_v0  ;;  %v68_v5 = vld [vmem:[%s4043_s1] sm:$0xff]  ;;  %v145_v7 = vmul.f32 %v120_v4, %v70_v2  ;;  %v71_v11 = vld [vmem:[%s4043_s1 + $0x18] sm:$0xff]  ;;  %v69_v14 = vld [vmem:[%s4043_s1 + $0x8] sm:$0xff]  ;;  %v148_v18 = vmul.f32 %v123_v10, %v73_v9 }
   0x4   :  { %v118_v6 = vld [vmem:[%s4045_s3] sm:$0xff]  ;;  %v121_v13 = vld [vmem:[%s4045_s3 + $0x18] sm:$0xff]  ;;  %v119_v15 = vld [vmem:[%s4045_s3 + $0x8] sm:$0xff] }
   0x5   :  { %v143_v8 = vmul.f32 %v118_v6, %v68_v5  ;;  %v181_v12 = vsel %vm168_vm0, %v147_v3, 0.0  ;;  %v175_v16 = vsel %vm168_vm0, %v145_v7, 0.0  ;;  %v146_v19 = vmul.f32 %v121_v13, %v71_v11 }
   0x6   :  { %182 = vadd.xlane.f32.xlu2 %v181_v12  ;;  %176 = vadd.xlane.f32.xlu1 %v175_v16  ;;  %v144_v20 = vmul.f32 %v119_v15, %v69_v14 }
   0x7   :  { %v169_v17 = vsel %vm168_vm0, %v143_v8, 0.0 }
   0x8   :  { %170 = vadd.xlane.f32.xlu0 %v169_v17 }
   0x9   :  { %17 = vsyncpa [#allocation3], 0  ;;  %v184_v21 = vsel %vm168_vm0, %v148_v18, 0.0  ;;  %v178_v22 = vsel %vm168_vm0, %v146_v19, 0.0  ;;  %v172_v23 = vsel %vm168_vm0, %v144_v20, 0.0  ;;  %v75_v24 = vld [vmem:[%s4043_s1 + $0x38] sm:$0xff] }
   0xa   :  { %v956_v25 = vld [vmem:[%s4050_s8] sm:$0xff]  ;;  %v125_v26 = vld [vmem:[%s4045_s3 + $0x38] sm:$0xff]  ;;  %v74_v27 = vld [vmem:[%s4043_s1 + $0x30] sm:$0xff]  ;;  %vm744_vm11 = vcmask 23552   ;;  %s1771_s26 = sshll.u32 %s4054_s12, 4  ;;  %s1772_s26 = int_to_ptr.hbm [resolvable:$true] %s1771_s26 }
   0xb   :  { %v124_v28 = vld [vmem:[%s4045_s3 + $0x30] sm:$0xff]  ;;  %v981_v29 = vmul.f32 %v956_v25, %v68_v5  ;;  %v150_v30 = vmul.f32 %v125_v26, %v75_v24  ;;  %v959_v35 = vld [vmem:[%s4050_s8 + $0x18] sm:$0xff]  ;;  %v957_v37 = vld [vmem:[%s4050_s8 + $0x8] sm:$0xff] }
   0xc   :  { %v149_v31 = vmul.f32 %v124_v28, %v74_v27  ;;  %v958_v36 = vld [vmem:[%s4050_s8 + $0x10] sm:$0xff]  ;;  %v984_v38 = vmul.f32 %v959_v35, %v71_v11  ;;  %v982_v40 = vmul.f32 %v957_v37, %v69_v14  ;;  %v961_v45 = vld [vmem:[%s4050_s8 + $0x28] sm:$0xff]  ;;  %v960_v46 = vld [vmem:[%s4050_s8 + $0x20] sm:$0xff] }
   0xd   :  { %v1006_v32 = vsel %vm168_vm0, %v981_v29, 0.0  ;;  %v190_v33 = vsel %vm168_vm0, %v150_v30, 0.0  ;;  %v983_v39 = vmul.f32 %v958_v36, %v70_v2  ;;  %v962_v44 = vld [vmem:[%s4050_s8 + $0x30] sm:$0xff]  ;;  %v986_v48 = vmul.f32 %v961_v45, %v73_v9  ;;  %v76_v53 = vld [vmem:[%s4043_s1 + $0x40] sm:$0xff]  ;;  %v963_v56 = vld [vmem:[%s4050_s8 + $0x38] sm:$0xff] }
   0xe   :  { %185 = vadd.xlane.f32.xlu2 %v184_v21  ;;  %179 = vadd.xlane.f32.xlu1 %v178_v22  ;;  %v187_v34 = vsel %vm168_vm0, %v149_v31, 0.0  ;;  %v1015_v41 = vsel %vm168_vm0, %v984_v38, 0.0  ;;  %v1009_v43 = vsel %vm168_vm0, %v982_v40, 0.0  ;;  %v987_v47 = vmul.f32 %v962_v44, %v74_v27  ;;  %v964_v54 = vld [vmem:[%s4050_s8 + $0x40] sm:$0xff]  ;;  %v78_v63 = vld [vmem:[%s4043_s1 + $0x50] sm:$0xff]  ;;  %v77_v1 = vld [vmem:[%s4043_s1 + $0x48] sm:$0xff] }
   0xf   :  { %v1012_v42 = vsel %vm168_vm0, %v983_v39, 0.0  ;;  %v985_v49 = vmul.f32 %v960_v46, %v2078_v0  ;;  %v1021_v51 = vsel %vm168_vm0, %v986_v48, 0.0  ;;  %v126_v55 = vld [vmem:[%s4045_s3 + $0x40] sm:$0xff]  ;;  %v989_v57 = vmul.f32 %v964_v54, %v76_v53  ;;  %v128_v0 = vld [vmem:[%s4045_s3 + $0x50] sm:$0xff]  ;;  %v965_v2 = vld [vmem:[%s4050_s8 + $0x48] sm:$0xff] }
  0x10   :  { %173 = vadd.xlane.f32.xlu0 %v172_v23  ;;  %v1024_v50 = vsel %vm168_vm0, %v987_v47, 0.0  ;;  %v151_v58 = vmul.f32 %v126_v55, %v76_v53  ;;  %v988_v59 = vmul.f32 %v963_v56, %v75_v24  ;;  %v127_v3 = vld [vmem:[%s4045_s3 + $0x48] sm:$0xff]  ;;  %v153_v4 = vmul.f32 %v128_v0, %v78_v63  ;;  %v79_v10 = vld [vmem:[%s4043_s1 + $0x58] sm:$0xff]  ;;  %v966_v13 = vld [vmem:[%s4050_s8 + $0x50] sm:$0xff] }
  0x11   :  { %v1018_v52 = vsel %vm168_vm0, %v985_v49, 0.0  ;;  %v1030_v60 = vsel %vm168_vm0, %v989_v57, 0.0  ;;  %v990_v5 = vmul.f32 %v965_v2, %v77_v1  ;;  %v152_v6 = vmul.f32 %v127_v3, %v77_v1  ;;  %v967_v11 = vld [vmem:[%s4050_s8 + $0x58] sm:$0xff]  ;;  %v81_v20 = vld [vmem:[%s4043_s1 + $0x68] sm:$0xff]  ;;  %v80_v22 = vld [vmem:[%s4043_s1 + $0x60] sm:$0xff] }
  0x12   :  { %v193_v61 = vsel %vm168_vm0, %v151_v58, 0.0  ;;  %v1027_v62 = vsel %vm168_vm0, %v988_v59, 0.0  ;;  %v199_v7 = vsel %vm168_vm0, %v153_v4, 0.0  ;;  %v129_v12 = vld [vmem:[%s4045_s3 + $0x58] sm:$0xff]  ;;  %v992_v14 = vmul.f32 %v967_v11, %v79_v10  ;;  %v131_v21 = vld [vmem:[%s4045_s3 + $0x68] sm:$0xff]  ;;  %v968_v23 = vld [vmem:[%s4050_s8 + $0x60] sm:$0xff] }
  0x13   :  { %v1033_v8 = vsel %vm168_vm0, %v990_v5, 0.0  ;;  %v196_v9 = vsel %vm168_vm0, %v152_v6, 0.0  ;;  %v154_v15 = vmul.f32 %v129_v12, %v79_v10  ;;  %v991_v16 = vmul.f32 %v966_v13, %v78_v63  ;;  %v130_v24 = vld [vmem:[%s4045_s3 + $0x60] sm:$0xff]  ;;  %v82_v31 = vld [vmem:[%s4043_s1 + $0x70] sm:$0xff]  ;;  %v971_v44 = vld [vmem:[%s4050_s8 + $0x78] sm:$0xff] }
  0x14   :  { %v1039_v17 = vsel %vm168_vm0, %v992_v14, 0.0  ;;  %v156_v25 = vmul.f32 %v131_v21, %v81_v20  ;;  %v993_v26 = vmul.f32 %v968_v23, %v80_v22  ;;  %v155_v27 = vmul.f32 %v130_v24, %v80_v22  ;;  %v133_v45 = vld [vmem:[%s4045_s3 + $0x78] sm:$0xff]  ;;  %v973_v53 = vld [vmem:[%s4050_s8 + $0x88] sm:$0xff]  ;;  %v972_v55 = vld [vmem:[%s4050_s8 + $0x80] sm:$0xff] }
  0x15   :  { %v202_v18 = vsel %vm168_vm0, %v154_v15, 0.0  ;;  %v1036_v19 = vsel %vm168_vm0, %v991_v16, 0.0  ;;  %v135_v54 = vld [vmem:[%s4045_s3 + $0x88] sm:$0xff]  ;;  %v137_v63 = vld [vmem:[%s4045_s3 + $0x98] sm:$0xff]  ;;  %v86_v0 = vld [vmem:[%s4043_s1 + $0x90] sm:$0xff] }
  0x16   :  { %1007 = vadd.xlane.f32.xlu2 %v1006_v32  ;;  %191 = vadd.xlane.f32.xlu1 %v190_v33  ;;  %v208_v28 = vsel %vm168_vm0, %v156_v25, 0.0  ;;  %v1042_v29 = vsel %vm168_vm0, %v993_v26, 0.0  ;;  %v205_v30 = vsel %vm168_vm0, %v155_v27, 0.0  ;;  %v970_v32 = vld [vmem:[%s4050_s8 + $0x70] sm:$0xff]  ;;  %v976_v10 = vld [vmem:[%s4050_s8 + $0xa0] sm:$0xff]  ;;  %v975_v12 = vld [vmem:[%s4050_s8 + $0x98] sm:$0xff] }
  0x17   :  { %v132_v33 = vld [vmem:[%s4045_s3 + $0x70] sm:$0xff]  ;;  %v995_v35 = vmul.f32 %v970_v32, %v82_v31  ;;  %v138_v11 = vld [vmem:[%s4045_s3 + $0xa0] sm:$0xff]  ;;  %v89_v21 = vld [vmem:[%s4043_s1 + $0xa8] sm:$0xff] }
  0x18   :  { %188 = vadd.xlane.f32.xlu0 %v187_v34  ;;  %v969_v34 = vld [vmem:[%s4050_s8 + $0x68] sm:$0xff]  ;;  %v157_v36 = vmul.f32 %v132_v33, %v82_v31  ;;  %v974_v1 = vld [vmem:[%s4050_s8 + $0x90] sm:$0xff]  ;;  %v979_v31 = vld [vmem:[%s4050_s8 + $0xb8] sm:$0xff] }
  0x19   :  { %v994_v37 = vmul.f32 %v969_v34, %v81_v20  ;;  %v1048_v38 = vsel %vm168_vm0, %v995_v35, 0.0  ;;  %v136_v2 = vld [vmem:[%s4045_s3 + $0x90] sm:$0xff]  ;;  %v999_v4 = vmul.f32 %v974_v1, %v86_v0  ;;  %v977_v22 = vld [vmem:[%s4050_s8 + $0xa8] sm:$0xff]  ;;  %v141_v32 = vld [vmem:[%s4045_s3 + $0xb8] sm:$0xff] }
  0x1a   :  { %v211_v39 = vsel %vm168_vm0, %v157_v36, 0.0  ;;  %v161_v5 = vmul.f32 %v136_v2, %v86_v0  ;;  %v140_v20 = vld [vmem:[%s4045_s3 + $0xb0] sm:$0xff]  ;;  %v139_v23 = vld [vmem:[%s4045_s3 + $0xa8] sm:$0xff]  ;;  %v1002_v25 = vmul.f32 %v977_v22, %v89_v21  ;;  %v2396_v0 = vld [vmem:[%s4042_s0 + $0x18] sm:$0xff] }
  0x1b   :  { %v1045_v40 = vsel %vm168_vm0, %v994_v37, 0.0  ;;  %v164_v26 = vmul.f32 %v139_v23, %v89_v21  ;;  %v978_v33 = vld [vmem:[%s4050_s8 + $0xb0] sm:$0xff] }
  0x1e   :  { %1016 = vadd.xlane.f32.xlu2 %v1015_v41  ;;  %1013 = vadd.xlane.f32.xlu1 %v1012_v42  ;;  %v84_v41 = vld [vmem:[%s4043_s1 + $0x80] sm:$0xff] }
  0x1f   :  { %v134_v42 = vld [vmem:[%s4045_s3 + $0x80] sm:$0xff]  ;;  %v997_v58 = vmul.f32 %v972_v55, %v84_v41 }
  0x20   :  { %1010 = vadd.xlane.f32.xlu0 %v1009_v43  ;;  %v83_v43 = vld [vmem:[%s4043_s1 + $0x78] sm:$0xff]  ;;  %v159_v46 = vmul.f32 %v134_v42, %v84_v41  ;;  %v97_v41 = vld [vmem:[%s4044_s2 + $0x20] sm:$0xff] }
  0x21   :  { %v996_v47 = vmul.f32 %v971_v44, %v83_v43  ;;  %v158_v48 = vmul.f32 %v133_v45, %v83_v43  ;;  %v2346_v42 = vld [vmem:[%s4042_s0 + $0x20] sm:$0xff] }
  0x22   :  { %v217_v49 = vsel %vm168_vm0, %v159_v46, 0.0  ;;  %v980_v55 = vld [vmem:[%s4050_s8 + $0xc0] sm:$0xff]  ;;  %v673_v1 = vsub.f32 %v97_v41, %v2346_v42 }
  0x26   :  { %1025 = vadd.xlane.f32.xlu2 %v1024_v50  ;;  %1022 = vadd.xlane.f32.xlu1 %v1021_v51  ;;  %v1051_v50 = vsel %vm168_vm0, %v996_v47, 0.0  ;;  %v214_v51 = vsel %vm168_vm0, %v158_v48, 0.0  ;;  %v95_v47 = vld [vmem:[%s4044_s2 + $0x10] sm:$0xff] }
  0x27   :  { %v2355_v48 = vld [vmem:[%s4042_s0 + $0x10] sm:$0xff] }
  0x28   :  { %1019 = vadd.xlane.f32.xlu0 %v1018_v52  ;;  %v85_v52 = vld [vmem:[%s4043_s1 + $0x88] sm:$0xff] }
  0x29   :  { %v998_v56 = vmul.f32 %v973_v53, %v85_v52  ;;  %v160_v57 = vmul.f32 %v135_v54, %v85_v52  ;;  %v92_v54 = vld [vmem:[%s4043_s1 + $0xc0] sm:$0xff] }
  0x2a   :  { %v1005_v2 = vmul.f32 %v980_v55, %v92_v54 }
  0x2b   :  { %v1057_v59 = vsel %vm168_vm0, %v998_v56, 0.0  ;;  %v142_v56 = vld [vmem:[%s4045_s3 + $0xc0] sm:$0xff] }
  0x2e   :  { %1031 = vadd.xlane.f32.xlu2 %v1030_v60  ;;  %194 = vadd.xlane.f32.xlu1 %v193_v61  ;;  %v220_v60 = vsel %vm168_vm0, %v160_v57, 0.0  ;;  %v1054_v61 = vsel %vm168_vm0, %v997_v58, 0.0  ;;  %v2376_v58 = vld [vmem:[%s4042_s0] sm:$0xff] }
  0x30   :  { %1028 = vadd.xlane.f32.xlu0 %v1027_v62  ;;  %v87_v62 = vld [vmem:[%s4043_s1 + $0x98] sm:$0xff] }
  0x31   :  { %v162_v3 = vmul.f32 %v137_v63, %v87_v62  ;;  %v1000_v15 = vmul.f32 %v975_v12, %v87_v62  ;;  %v96_v63 = vld [vmem:[%s4044_s2 + $0x18] sm:$0xff]  ;;  %v1078_v12 = vsel %vm168_vm0, %v1005_v2, 0.0 }
  0x33   :  { %v226_v6 = vsel %vm168_vm0, %v162_v3, 0.0  ;;  %v167_v3 = vmul.f32 %v142_v56, %v92_v54 }
  0x36   :  { %200 = vadd.xlane.f32.xlu2 %v199_v7  ;;  %1034 = vadd.xlane.f32.xlu1 %v1033_v8  ;;  %v1060_v7 = vsel %vm168_vm0, %v999_v4, 0.0  ;;  %v223_v8 = vsel %vm168_vm0, %v161_v5, 0.0  ;;  %v671_v4 = vsub.f32 %v95_v47, %v2355_v48  ;;  %v2457_v47 = vld [vmem:[%s4042_s0 + $0x8] sm:$0xff] }
  0x38   :  { %197 = vadd.xlane.f32.xlu0 %v196_v9  ;;  %v88_v9 = vld [vmem:[%s4043_s1 + $0xa0] sm:$0xff] }
  0x39   :  { %v1001_v13 = vmul.f32 %v976_v10, %v88_v9  ;;  %v163_v14 = vmul.f32 %v138_v11, %v88_v9  ;;  %v672_v9 = vsub.f32 %v96_v63, %v2396_v0  ;;  %v2406_v10 = vmul.f32 %v673_v1, %v673_v1 }
  0x3b   :  { %v1066_v16 = vsel %vm168_vm0, %v1001_v13, 0.0  ;;  %v241_v13 = vsel %vm168_vm0, %v167_v3, 0.0  ;;  %v2419_v22 = vmul.f32 %v672_v9, %v672_v9 }
  0x3e   :  { %1040 = vadd.xlane.f32.xlu2 %v1039_v17  ;;  %203 = vadd.xlane.f32.xlu1 %v202_v18  ;;  %v229_v17 = vsel %vm168_vm0, %v163_v14, 0.0  ;;  %v1063_v18 = vsel %vm168_vm0, %v1000_v15, 0.0  ;;  %v2410_v14 = vmul.f32 %v671_v4, %v671_v4 }
  0x40   :  { %1037 = vadd.xlane.f32.xlu0 %v1036_v19  ;;  %v90_v19 = vld [vmem:[%s4043_s1 + $0xb0] sm:$0xff] }
  0x41   :  { %v165_v24 = vmul.f32 %v140_v20, %v90_v19  ;;  %v1003_v36 = vmul.f32 %v978_v33, %v90_v19 }
  0x43   :  { %v235_v27 = vsel %vm168_vm0, %v165_v24, 0.0 }
  0x46   :  { %209 = vadd.xlane.f32.xlu2 %v208_v28  ;;  %1043 = vadd.xlane.f32.xlu1 %v1042_v29  ;;  %v1069_v28 = vsel %vm168_vm0, %v1002_v25, 0.0  ;;  %v232_v29 = vsel %vm168_vm0, %v164_v26, 0.0 }
  0x48   :  { %206 = vadd.xlane.f32.xlu0 %v205_v30  ;;  %v91_v30 = vld [vmem:[%s4043_s1 + $0xb8] sm:$0xff] }
  0x49   :  { %v1004_v34 = vmul.f32 %v979_v31, %v91_v30  ;;  %v166_v35 = vmul.f32 %v141_v32, %v91_v30 }
  0x4b   :  { %v1075_v45 = vsel %vm168_vm0, %v1004_v34, 0.0 }
  0x4e   :  { %1049 = vadd.xlane.f32.xlu2 %v1048_v38  ;;  %212 = vadd.xlane.f32.xlu1 %v211_v39 }
  0x50   :  { %1046 = vadd.xlane.f32.xlu0 %v1045_v40 }
  0x56   :  { %218 = vadd.xlane.f32.xlu2 %v217_v49  ;;  %1052 = vadd.xlane.f32.xlu1 %v1051_v50  ;;  %v93_v49 = vld [vmem:[%s4044_s2] sm:$0xff]  ;;  %v238_v50 = vsel %vm168_vm0, %v166_v35, 0.0 }
  0x57   :  { %v669_v5 = vsub.f32 %v93_v49, %v2376_v58 }
  0x58   :  { %215 = vadd.xlane.f32.xlu0 %v214_v51  ;;  %v1072_v51 = vsel %vm168_vm0, %v1003_v36, 0.0 }
  0x59   :  { %v2412_v15 = vmul.f32 %v669_v5, %v669_v5 }
  0x5e   :  { %1058 = vadd.xlane.f32.xlu2 %v1057_v59  ;;  %221 = vadd.xlane.f32.xlu1 %v220_v60  ;;  %v98_v59 = vld [vmem:[%s4044_s2 + $0x28] sm:$0xff] }
  0x5f   :  { %v2384_v60 = vld [vmem:[%s4042_s0 + $0x28] sm:$0xff] }
  0x60   :  { %1055 = vadd.xlane.f32.xlu0 %v1054_v61 }
  0x66   :  { %227 = vadd.xlane.f32.xlu2 %v226_v6  ;;  %1061 = vadd.xlane.f32.xlu1 %v1060_v7  ;;  %v674_v7 = vsub.f32 %v98_v59, %v2384_v60 }
  0x68   :  { %224 = vadd.xlane.f32.xlu0 %v223_v8 }
  0x6e   :  { %1067 = vadd.xlane.f32.xlu2 %v1066_v16  ;;  %230 = vadd.xlane.f32.xlu1 %v229_v17  ;;  %v2414_v16 = vmul.f32 %v674_v7, %v674_v7 }
  0x70   :  { %1064 = vadd.xlane.f32.xlu0 %v1063_v18 }
  0x76   :  { %236 = vadd.xlane.f32.xlu2 %v235_v27  ;;  %1070 = vadd.xlane.f32.xlu1 %v1069_v28 }
  0x78   :  { %233 = vadd.xlane.f32.xlu0 %v232_v29 }
  0x79   :  { %v183_v37 = vpop.xlane.xlu2 %182  ;;  %v177_v39 = vpop.xlane.xlu1 %176 }
  0x7a   :  { %v248_v38 = vadd.f32 0.05, %v183_v37  ;;  %v246_v43 = vadd.f32 0.05, %v177_v39 }
  0x7b   :  { %v171_v40 = vpop.xlane.xlu0 %170 }
  0x7c   :  { %v244_v44 = vadd.f32 0.05, %v171_v40  ;;  %v273_v46 = vmul.f32 2.0, %v248_v38  ;;  %v271_v52 = vmul.f32 2.0, %v246_v43 }
  0x7e   :  { %v269_v53 = vmul.f32 2.0, %v244_v44  ;;  %v2371_v57 = vmul.f32 %v273_v46, %v248_v38  ;;  %1076 = vadd.xlane.f32.xlu2 %v1075_v45  ;;  %v2386_v61 = vmul.f32 %v271_v52, %v246_v43  ;;  %239 = vadd.xlane.f32.xlu1 %v238_v50  ;;  %v94_v46 = vld [vmem:[%s4044_s2 + $0x8] sm:$0xff] }
  0x7f   :  { %v670_v1 = vsub.f32 %v94_v46, %v2457_v47 }
  0x80   :  { %v2388_v62 = vmul.f32 %v269_v53, %v244_v44  ;;  %1073 = vadd.xlane.f32.xlu0 %v1072_v51  ;;  %1782 = vrcp.f32 %v2371_v57  ;;  %v386_v20 = vand.u32 2147483648, %v2371_v57  ;;  %v384_v25 = vand.u32 2147483647, %v2371_v57 }
  0x81   :  { %1784 = vrcp.f32 %v2386_v61  ;;  %v186_v6 = vpop.xlane.xlu2 %185  ;;  %v180_v8 = vpop.xlane.xlu1 %179  ;;  %vm380_vm1 = vweird.f32 %v2371_v57  ;;  %v356_v29 = vand.u32 2147483647, %v2386_v61  ;;  %v358_v34 = vand.u32 2147483648, %v2386_v61 }
  0x82   :  { %1786 = vrcp.f32 %v2388_v62  ;;  %v249_v11 = vadd.f32 0.05, %v186_v6  ;;  %v247_v17 = vadd.f32 0.05, %v180_v8  ;;  %v387_v37 = vor.u32 1.1754944e-38, %v386_v20 }
  0x83   :  { %1788 = vlog2.f32 %v248_v38  ;;  %v174_v18 = vpop.xlane.xlu0 %173  ;;  %vm352_vm2 = vweird.f32 %v2386_v61  ;;  %vm324_vm3 = vweird.f32 %v2388_v62  ;;  %vm2444_vm4 = vcmp.eq.f32.partialorder %v384_v25, 8.507059e+37 }
  0x84   :  { %1790 = vlog2.f32 %v246_v43  ;;  %v274_v21 = vmul.f32 2.0, %v249_v11  ;;  %v272_v26 = vmul.f32 2.0, %v247_v17  ;;  %v245_v31 = vadd.f32 0.05, %v174_v18 }
  0x85   :  { %1792 = vlog2.f32 %v244_v44  ;;  %vm2459_vm5 = vcmp.eq.f32.partialorder %v356_v29, 8.507059e+37  ;;  %v359_v52 = vor.u32 1.1754944e-38, %v358_v34  ;;  %v328_v54 = vand.u32 2147483647, %v2388_v62 }
  0x86   :  { %v2416_v19 = vpop.eup %1782  ;;  %1079 = vadd.xlane.f32.xlu1 %v1078_v12  ;;  %v2432_v30 = vmul.f32 %v274_v21, %v249_v11  ;;  %v2437_v36 = vmul.f32 %v272_v26, %v247_v17  ;;  %v270_v49 = vmul.f32 2.0, %v245_v31  ;;  %v330_v56 = vand.u32 2147483648, %v2388_v62 }
  0x87   :  { %v2421_v23 = vpop.eup %1784  ;;  %v376_v24 = vmul.f32 %v2416_v19, %v2371_v57  ;;  %vm381_vm6 = vweird.f32 %v2416_v19  ;;  %vm2487_vm10 = vcmp.eq.f32.partialorder %v328_v54, 8.507059e+37 }
  0x88   :  { %242 = vadd.xlane.f32.xlu0 %v241_v13  ;;  %v2426_v27 = vpop.eup %1786  ;;  %v348_v28 = vmul.f32 %v2421_v23, %v2386_v61  ;;  %1794 = vrcp.f32 %v2432_v30  ;;  %vm353_vm7 = vweird.f32 %v2421_v23  ;;  %v2477_v4 = vmul.f32 %v270_v49, %v245_v31  ;;  %vm2483_vm9 = vmor %vm380_vm1, %vm381_vm6 }
  0x89   :  { %v1789_v32 = vpop.eup %1788  ;;  %v377_v33 = vsub.f32 1.0, %v376_v24  ;;  %v320_v35 = vmul.f32 %v2426_v27, %v2388_v62  ;;  %1796 = vrcp.f32 %v2437_v36  ;;  %vm325_vm8 = vweird.f32 %v2426_v27  ;;  %vm2501_vm12 = vmor %vm352_vm2, %vm353_vm7  ;;  %v192_v25 = vpop.xlane.xlu1 %191 }
  0x8a   :  { %v349_v38 = vsub.f32 1.0, %v348_v28  ;;  %v1791_v41 = vpop.eup %1790  ;;  %v2448_v44 = vmul.f32 0.6931472, %v1789_v32  ;;  %1798 = vlog2.f32 %v249_v11  ;;  %v400_v11 = vand.u32 2147483648, %v2432_v30  ;;  %vm2515_vm13 = vmor %vm324_vm3, %vm325_vm8  ;;  %v1008_v26 = vpop.xlane.xlu2 %1007 }
  0x8b   :  { %v378_v39 = vmul.f32 %v2416_v19, %v377_v33  ;;  %v321_v40 = vsub.f32 1.0, %v320_v35  ;;  %v1793_v50 = vpop.eup %1792  ;;  %1800 = vlog2.f32 %v247_v17  ;;  %v2470_v63 = vmul.f32 0.6931472, %v1791_v41 }
  0x8c   :  { %v350_v45 = vmul.f32 %v2421_v23, %v349_v38  ;;  %1802 = vlog2.f32 %v245_v31  ;;  %v803_v8 = vmul.f32 0.6931472, %v1793_v50  ;;  %v331_v17 = vor.u32 1.1754944e-38, %v330_v56 }
  0x8d   :  { %v322_v53 = vmul.f32 %v2426_v27, %v321_v40  ;;  %v379_v55 = vadd.f32 %v2416_v19, %v378_v39  ;;  %v398_v18 = vand.u32 2147483647, %v2432_v30  ;;  %vm394_vm14 = vweird.f32 %v2432_v30 }
  0x8e   :  { %v351_v59 = vadd.f32 %v2421_v23, %v350_v45  ;;  %v2473_v2 = vpop.eup %1794  ;;  %v370_v24 = vand.u32 2147483647, %v2437_v36  ;;  %vm366_vm15 = vweird.f32 %v2437_v36  ;;  %1804 = vrcp.f32 %v2477_v4 }
  0x8f   :  { %v323_v3 = vadd.f32 %v2426_v27, %v322_v53  ;;  %v2479_v5 = vpop.eup %1796  ;;  %v390_v9 = vmul.f32 %v2473_v2, %v2432_v30  ;;  %v383_v57 = vsel %vm2483_vm9, %v2416_v19, %v379_v55  ;;  %v401_v32 = vor.u32 1.1754944e-38, %v400_v11  ;;  %v100_v55 = vld [vmem:[%s4044_s2 + $0x38] sm:$0xff] }
  0x90   :  { %v1799_v12 = vpop.eup %1798  ;;  %v362_v20 = vmul.f32 %v2479_v5, %v2437_v36  ;;  %v355_v21 = vsel %vm2501_vm12, %v2421_v23, %v351_v59  ;;  %v388_v62 = vsel %vm2444_vm4, %v387_v37, %v383_v57  ;;  %vm2533_vm0 = vcmp.eq.f32.partialorder %v398_v18, 8.507059e+37 }
  0x91   :  { %v391_v19 = vsub.f32 1.0, %v390_v9  ;;  %v1801_v28 = vpop.eup %1800  ;;  %v327_v23 = vsel %vm2515_vm13, %v2426_v27, %v323_v3  ;;  %v2529_v33 = vmul.f32 0.6931472, %v1799_v12  ;;  %v360_v35 = vsel %vm2459_vm5, %v359_v52, %v355_v21  ;;  %v189_v21 = vpop.xlane.xlu0 %188 }
  0x92   :  { %v363_v29 = vsub.f32 1.0, %v362_v20  ;;  %v1803_v34 = vpop.eup %1802  ;;  %v251_v39 = vadd.f32 0.05, %v192_v25  ;;  %v1081_v40 = vadd.f32 0.05, %v1008_v26  ;;  %v332_v37 = vsel %vm2487_vm10, %v331_v17, %v327_v23  ;;  %v1014_v25 = vpop.xlane.xlu1 %1013 }
  0x93   :  { %v392_v31 = vmul.f32 %v2473_v2, %v391_v19  ;;  %vm2540_vm1 = vcmp.eq.f32.partialorder %v370_v24, 8.507059e+37  ;;  %v372_v43 = vand.u32 2147483648, %v2437_v36  ;;  %v809_v45 = vmul.f32 0.6931472, %v1801_v28  ;;  %v1017_v41 = vpop.xlane.xlu2 %1016 }
  0x94   :  { %v364_v27 = vmul.f32 %v2479_v5, %v363_v29  ;;  %v805_v46 = vmul.f32 0.6931472, %v1803_v34  ;;  %v723_v49 = vmul.f32 %v2406_v10, %v388_v62  ;;  %vm395_vm2 = vweird.f32 %v2473_v2  ;;  %v2557_v10 = vld [vmem:[%s4042_s0 + $0x38] sm:$0xff]  ;;  %v1805_v56 = vpop.eup %1804 }
  0x95   :  { %v393_v50 = vadd.f32 %v2473_v2, %v392_v31  ;;  %v276_v51 = vmul.f32 2.0, %v251_v39  ;;  %v721_v52 = vmul.f32 %v2410_v14, %v360_v35  ;;  %vm367_vm3 = vweird.f32 %v2479_v5  ;;  %vm2564_vm4 = vmor %vm394_vm14, %vm395_vm2 }
  0x96   :  { %v365_v53 = vadd.f32 %v2479_v5, %v364_v27  ;;  %v852_v54 = vadd.f32 %v805_v46, %v803_v8  ;;  %v719_v59 = vmul.f32 %v2412_v15, %v332_v37  ;;  %v695_v3 = vmul.f32 %v670_v1, %v670_v1  ;;  %vm2578_vm5 = vmor %vm366_vm15, %vm367_vm3 }
  0x97   :  { %v2560_v6 = vmul.f32 %v276_v51, %v251_v39  ;;  %v1106_v14 = vmul.f32 2.0, %v1081_v40  ;;  %v373_v8 = vor.u32 1.1754944e-38, %v372_v43  ;;  %v334_v9 = vmul.f32 %v1805_v56, %v2477_v4 }
  0x98   :  { %v342_v11 = vand.u32 2147483647, %v2477_v4  ;;  %v344_v12 = vand.u32 2147483648, %v2477_v4  ;;  %v397_v15 = vsel %vm2564_vm4, %v2473_v2, %v393_v50  ;;  %v853_v1 = vadd.f32 %v852_v54, %v2470_v63 }
  0x99   :  { %1806 = vrcp.f32 %v2560_v6  ;;  %v676_v57 = vsub.f32 %v100_v55, %v2557_v10  ;;  %v2586_v13 = vsel %vm744_vm11, %v723_v49, 0.0  ;;  %v2589_v17 = vsel %vm744_vm11, %v721_v52, 0.0 }
  0x9a   :  { %v369_v36 = vsel %vm2578_vm5, %v2479_v5, %v365_v53  ;;  %v335_v2 = vsub.f32 1.0, %v334_v9  ;;  %v745_v18 = vsel %vm744_vm11, %v719_v59, 0.0  ;;  %vm338_vm6 = vweird.f32 %v2477_v4  ;;  %v931_v5 = vld [vmem:[%s4049_s7] sm:$0xff]  ;;  %v99_v9 = vld [vmem:[%s4044_s2 + $0x30] sm:$0xff] }
  0x9b   :  { %v854_v63 = vadd.f32 %v853_v1, %v809_v45  ;;  %v2596_v20 = vmul.f32 %v1106_v14, %v1081_v40  ;;  %v402_v61 = vsel %vm2533_vm0, %v401_v32, %v397_v15  ;;  %vm339_vm7 = vweird.f32 %v1805_v56 }
  0x9c   :  { %v336_v19 = vmul.f32 %v1805_v56, %v335_v2  ;;  %vm2600_vm8 = vcmp.eq.f32.partialorder %v342_v11, 8.507059e+37  ;;  %v374_v26 = vsel %vm2540_vm1, %v373_v8, %v369_v36  ;;  %v345_v28 = vor.u32 1.1754944e-38, %v344_v12  ;;  %vm340_vm9 = vmor %vm338_vm6, %vm339_vm7  ;;  %v2654_v11 = vld [vmem:[%s4042_s0 + $0x30] sm:$0xff] }
  0x9d   :  { %v2609_v23 = vmul.f32 %v676_v57, %v676_v57  ;;  %1808 = vrcp.f32 %v2596_v20  ;;  %v855_v62 = vadd.f32 %v854_v63, %v2448_v44  ;;  %v250_v31 = vadd.f32 0.05, %v189_v21  ;;  %v933_v57 = vld [vmem:[%s4049_s7 + $0x10] sm:$0xff] }
  0x9e   :  { %v337_v29 = vadd.f32 %v1805_v56, %v336_v19  ;;  %1810 = vlog2.f32 %v251_v39  ;;  %v724_v34 = vmul.f32 %v2414_v16, %v402_v61  ;;  %v1506_v35 = vsub.f32 %v931_v5, %v2376_v58 }
  0x9f   :  { %v2613_v32 = vpop.eup %1806  ;;  %1812 = vlog2.f32 %v1081_v40  ;;  %v1083_v38 = vadd.f32 0.05, %v1014_v25  ;;  %v722_v27 = vmul.f32 %v2419_v22, %v374_v26  ;;  %v856_v44 = vadd.f32 %v855_v62, %v2529_v33 }
  0xa0   :  { %v341_v37 = vsel %vm340_vm9, %v1805_v56, %v337_v29  ;;  %v418_v39 = vmul.f32 %v2613_v32, %v2560_v6  ;;  %v426_v16 = vand.u32 2147483647, %v2560_v6  ;;  %v275_v4 = vmul.f32 2.0, %v250_v31 }
  0xa1   :  { %v346_v43 = vsel %vm2600_vm8, %v345_v28, %v341_v37  ;;  %1814 = vlog2.f32 %v250_v31  ;;  %v428_v40 = vand.u32 2147483648, %v2560_v6  ;;  %v1108_v46 = vmul.f32 2.0, %v1083_v38 }
  0xa2   :  { %v720_v45 = vmul.f32 %v695_v3, %v346_v43  ;;  %v419_v58 = vsub.f32 1.0, %v418_v39  ;;  %v754_v49 = vsel %vm744_vm11, %v724_v34, 0.0  ;;  %vm422_vm10 = vweird.f32 %v2560_v6  ;;  %v1011_v43 = vpop.xlane.xlu0 %1010 }
  0xa3   :  { %v2627_v22 = vpop.eup %1808  ;;  %v2631_v33 = vmul.f32 %v275_v4, %v250_v31  ;;  %v2633_v50 = vadd.f32 0.05, %v1017_v41  ;;  %v750_v52 = vsel %vm744_vm11, %v722_v27, 0.0  ;;  %vm2640_vm12 = vcmp.eq.f32.partialorder %v426_v16, 8.507059e+37 }
  0xa4   :  { %v1811_v51 = vpop.eup %1810  ;;  %v746_v53 = vsel %vm744_vm11, %v720_v45, 0.0  ;;  %v420_v54 = vmul.f32 %v2613_v32, %v419_v58  ;;  %v1157_v55 = vmul.f32 %v2627_v22, %v2596_v20  ;;  %v2644_v14 = vmul.f32 %v1506_v35, %v1506_v35 }
  0xa5   :  { %v1813_v56 = vpop.eup %1812  ;;  %v747_v59 = vadd.f32 %v746_v53, %v745_v18  ;;  %1816 = vrcp.f32 %v2631_v33  ;;  %v429_v7 = vor.u32 1.1754944e-38, %v428_v40  ;;  %vm1161_vm13 = vweird.f32 %v2596_v20  ;;  %v1023_v40 = vpop.xlane.xlu1 %1022 }
  0xa6   :  { %v1158_v8 = vsub.f32 1.0, %v1157_v55  ;;  %v2656_v12 = vmul.f32 %v1108_v46, %v1083_v38  ;;  %v421_v1 = vadd.f32 %v2613_v32, %v420_v54  ;;  %vm423_vm14 = vweird.f32 %v2613_v32 }
  0xa7   :  { %v1815_v15 = vpop.eup %1814  ;;  %v749_v30 = vadd.f32 %v2589_v17, %v747_v59  ;;  %v1109_v36 = vmul.f32 2.0, %v2633_v50  ;;  %v1165_v18 = vand.u32 2147483647, %v2596_v20  ;;  %v1167_v63 = vand.u32 2147483648, %v2596_v20  ;;  %vm2673_vm0 = vmor %vm422_vm10, %vm423_vm14 }
  0xa8   :  { %v1159_v2 = vmul.f32 %v2627_v22, %v1158_v8  ;;  %v815_v21 = vmul.f32 0.6931472, %v1815_v15  ;;  %vm1162_vm15 = vweird.f32 %v2627_v22  ;;  %v675_v17 = vsub.f32 %v99_v9, %v2654_v11 }
  0xa9   :  { %v751_v61 = vadd.f32 %v750_v52, %v749_v30  ;;  %1818 = vrcp.f32 %v2656_v12  ;;  %v1508_v25 = vsub.f32 %v933_v57, %v2355_v48  ;;  %v425_v28 = vsel %vm2673_vm0, %v2613_v32, %v421_v1  ;;  %vm2693_vm1 = vmor %vm1161_vm13, %vm1162_vm15  ;;  %v932_v57 = vld [vmem:[%s4049_s7 + $0x8] sm:$0xff] }
  0xaa   :  { %v1160_v24 = vadd.f32 %v2627_v22, %v1159_v2  ;;  %v2678_v5 = vadd.f32 %v856_v44, %v815_v21  ;;  %1820 = vlog2.f32 %v1083_v38  ;;  %v412_v29 = vand.u32 2147483647, %v2631_v33  ;;  %v1026_v2 = vpop.xlane.xlu2 %1025 }
  0xab   :  { %v1817_v26 = vpop.eup %1816  ;;  %v753_v6 = vadd.f32 %v2586_v13, %v751_v61  ;;  %v2687_v62 = vmul.f32 %v1109_v36, %v2633_v50  ;;  %v2689_v31 = vmul.f32 0.6931472, %v1811_v51  ;;  %vm2697_vm2 = vcmp.eq.f32.partialorder %v1165_v18, 8.507059e+37  ;;  %v934_v13 = vld [vmem:[%s4049_s7 + $0x18] sm:$0xff] }
  0xac   :  { %v2701_v32 = vmul.f32 0.6931472, %v1813_v56  ;;  %v404_v35 = vmul.f32 %v1817_v26, %v2631_v33  ;;  %v1164_v20 = vsel %vm2693_vm1, %v2627_v22, %v1160_v24  ;;  %v1168_v38 = vor.u32 1.1754944e-38, %v1167_v63  ;;  %v936_v63 = vld [vmem:[%s4049_s7 + $0x28] sm:$0xff] }
  0xad   :  { %v414_v27 = vand.u32 2147483648, %v2631_v33  ;;  %v755_v37 = vadd.f32 %v754_v49, %v753_v6  ;;  %v430_v39 = vsel %vm2640_vm12, %v429_v7, %v425_v28  ;;  %v700_v41 = vmul.f32 %v675_v17, %v675_v17 }
  0xae   :  { %v405_v44 = vsub.f32 1.0, %v404_v35  ;;  %1822 = vrcp.f32 %v2687_v62  ;;  %vm408_vm3 = vweird.f32 %v2631_v33  ;;  %vm2717_vm4 = vcmp.eq.f32.partialorder %v412_v29, 8.507059e+37 }
  0xaf   :  { %v2714_v16 = vpop.eup %1818  ;;  %v2721_v45 = vmul.f32 %v1508_v25, %v1508_v25  ;;  %v1509_v58 = vsub.f32 %v934_v13, %v2396_v0  ;;  %v1169_v22 = vsel %vm2697_vm2, %v1168_v38, %v1164_v20  ;;  %vm409_vm5 = vweird.f32 %v1817_v26 }
  0xb0   :  { %v1821_v46 = vpop.eup %1820  ;;  %v406_v49 = vmul.f32 %v1817_v26, %v405_v44  ;;  %v1185_v51 = vmul.f32 %v2714_v16, %v2656_v12  ;;  %v726_v52 = vmul.f32 %v2609_v23, %v430_v39  ;;  %v415_v53 = vor.u32 1.1754944e-38, %v414_v27  ;;  %vm410_vm7 = vmor %vm408_vm3, %vm409_vm5 }
  0xb1   :  { %vm1189_vm6 = vweird.f32 %v2656_v12  ;;  %v1082_v54 = vadd.f32 0.05, %v1011_v43  ;;  %v1193_v0 = vand.u32 2147483647, %v2656_v12  ;;  %v2731_v59 = vadd.f32 0.05, %v1023_v40 }
  0xb2   :  { %v407_v55 = vadd.f32 %v1817_v26, %v406_v49  ;;  %v1186_v56 = vsub.f32 1.0, %v1185_v51  ;;  %v1556_v3 = vmul.f32 %v2644_v14, %v1169_v22  ;;  %v1195_v7 = vand.u32 2147483648, %v2656_v12 }
  0xb3   :  { %v2737_v8 = vmul.f32 0.6931472, %v1821_v46  ;;  %v1107_v23 = vmul.f32 2.0, %v1082_v54  ;;  %1824 = vlog2.f32 %v2633_v50  ;;  %v1111_v1 = vmul.f32 2.0, %v2731_v59  ;;  %v1020_v46 = vpop.xlane.xlu0 %1019 }
  0xb4   :  { %v2739_v9 = vpop.eup %1822  ;;  %v411_v15 = vsel %vm410_vm7, %v1817_v26, %v407_v55  ;;  %v1187_v30 = vmul.f32 %v2714_v16, %v1186_v56  ;;  %vm1190_vm8 = vweird.f32 %v2714_v16  ;;  %1826 = vlog2.f32 %v1082_v54 }
  0xb5   :  { %v416_v14 = vsel %vm2717_vm4, %v415_v53, %v411_v15  ;;  %v1199_v33 = vmul.f32 %v2739_v9, %v2687_v62  ;;  %v2752_v36 = vmul.f32 %v1107_v23, %v1082_v54  ;;  %v2759_v21 = vmul.f32 %v1111_v1, %v2731_v59  ;;  %vm2769_vm9 = vmor %vm1189_vm6, %vm1190_vm8  ;;  %v195_v1 = vpop.xlane.xlu1 %194 }
  0xb6   :  { %v725_v18 = vmul.f32 %v700_v41, %v416_v14  ;;  %v1188_v50 = vadd.f32 %v2714_v16, %v1187_v30  ;;  %v1207_v17 = vand.u32 2147483647, %v2687_v62  ;;  %v1209_v19 = vand.u32 2147483648, %v2687_v62 }
  0xb7   :  { %v1200_v61 = vsub.f32 1.0, %v1199_v33  ;;  %1828 = vrcp.f32 %v2752_v36  ;;  %v1507_v26 = vsub.f32 %v932_v57, %v2457_v47  ;;  %v1087_v28 = vadd.f32 0.05, %v1026_v2 }
  0xb8   :  { %v756_v24 = vsel %vm744_vm11, %v725_v18, 0.0  ;;  %1830 = vrcp.f32 %v2759_v21  ;;  %v1192_v6 = vsel %vm2769_vm9, %v2714_v16, %v1188_v50  ;;  %v1511_v48 = vsub.f32 %v936_v63, %v2384_v60 }
  0xb9   :  { %v2775_v29 = vadd.f32 %v756_v24, %v755_v37  ;;  %v1201_v34 = vmul.f32 %v2739_v9, %v1200_v61  ;;  %v1825_v12 = vpop.eup %1824  ;;  %v758_v35 = vsel %vm744_vm11, %v726_v52, 0.0  ;;  %vm1194_vm10 = vcmp.eq.f32.partialorder %v1193_v0, 8.507059e+37 }
  0xba   :  { %v1196_v13 = vor.u32 1.1754944e-38, %v1195_v7  ;;  %v1179_v47 = vand.u32 2147483647, %v2752_v36  ;;  %v2785_v20 = vsel %vm744_vm11, %v1556_v3, 0.0  ;;  %vm1203_vm12 = vweird.f32 %v2687_v62  ;;  %v1827_v37 = vpop.eup %1826 }
  0xbb   :  { %vm2788_vm13 = vcmp.eq.f32.partialorder %v1207_v17, 8.507059e+37  ;;  %v1534_v27 = vmul.f32 %v1509_v58, %v1509_v58  ;;  %v1210_v60 = vor.u32 1.1754944e-38, %v1209_v19  ;;  %v1181_v44 = vand.u32 2147483648, %v2752_v36  ;;  %v1029_v51 = vpop.xlane.xlu0 %1028 }
  0xbc   :  { %v1197_v39 = vsel %vm1194_vm10, %v1196_v13, %v1192_v6  ;;  %v1112_v41 = vmul.f32 2.0, %v1087_v28  ;;  %v1202_v16 = vadd.f32 %v2739_v9, %v1201_v34  ;;  %vm1204_vm14 = vweird.f32 %v2739_v9  ;;  %v935_v6 = vld [vmem:[%s4049_s7 + $0x20] sm:$0xff] }
  0xbd   :  { %v1829_v43 = vpop.eup %1828  ;;  %v1532_v4 = vmul.f32 %v1507_v26, %v1507_v26  ;;  %v2795_v40 = vmul.f32 %v1511_v48, %v1511_v48  ;;  %v2799_v49 = vmul.f32 0.6931472, %v1825_v12  ;;  %vm1175_vm15 = vweird.f32 %v2752_v36  ;;  %vm2814_vm1 = vmor %vm1203_vm12, %vm1204_vm14 }
  0xbe   :  { %v2797_v22 = vpop.eup %1830  ;;  %v1171_v58 = vmul.f32 %v1829_v43, %v2752_v36  ;;  %vm2803_vm0 = vcmp.eq.f32.partialorder %v1179_v47, 8.507059e+37  ;;  %v1558_v52 = vmul.f32 %v2721_v45, %v1197_v39  ;;  %v1640_v53 = vmul.f32 0.6931472, %v1827_v37  ;;  %v1032_v39 = vpop.xlane.xlu2 %1031 }
  0xbf   :  { %v1227_v54 = vmul.f32 %v2797_v22, %v2759_v21  ;;  %v2810_v55 = vmul.f32 %v1112_v41, %v1087_v28  ;;  %v1182_v3 = vor.u32 1.1754944e-38, %v1181_v44  ;;  %vm1231_vm2 = vweird.f32 %v2759_v21 }
  0xc0   :  { %v1172_v0 = vsub.f32 1.0, %v1171_v58  ;;  %v1085_v7 = vadd.f32 0.05, %v1020_v46  ;;  %v1206_v45 = vsel %vm2814_vm1, %v2739_v9, %v1202_v16  ;;  %v1235_v15 = vand.u32 2147483647, %v2759_v21  ;;  %v937_v9 = vld [vmem:[%s4049_s7 + $0x30] sm:$0xff] }
  0xc1   :  { %v1228_v23 = vsub.f32 1.0, %v1227_v54  ;;  %1832 = vrcp.f32 %v2810_v55  ;;  %vm1176_vm3 = vweird.f32 %v1829_v43  ;;  %v1237_v62 = vand.u32 2147483648, %v2759_v21 }
  0xc2   :  { %v1173_v30 = vmul.f32 %v1829_v43, %v1172_v0  ;;  %1834 = vlog2.f32 %v2731_v59  ;;  %v1687_v14 = vadd.f32 %v1640_v53, %v2701_v32  ;;  %v1110_v57 = vmul.f32 2.0, %v1085_v7  ;;  %vm1177_vm4 = vmor %vm1175_vm15, %vm1176_vm3 }
  0xc3   :  { %v1229_v33 = vmul.f32 %v2797_v22, %v1228_v23  ;;  %1836 = vlog2.f32 %v1087_v28  ;;  %v2832_v2 = vsel %vm744_vm11, %v1558_v52, 0.0  ;;  %v1211_v18 = vsel %vm2788_vm13, %v1210_v60, %v1206_v45 }
  0xc4   :  { %v1174_v50 = vadd.f32 %v1829_v43, %v1173_v30  ;;  %1838 = vlog2.f32 %v1085_v7  ;;  %vm1232_vm5 = vweird.f32 %v2797_v22  ;;  %v2840_v59 = vmul.f32 %v1110_v57, %v1085_v7 }
  0xc5   :  { %v1230_v32 = vadd.f32 %v2797_v22, %v1229_v33  ;;  %v252_v63 = vadd.f32 0.05, %v195_v1  ;;  %v1512_v17 = vsub.f32 %v937_v9, %v2654_v11  ;;  %v2844_v19 = vadd.f32 %v758_v35, %v2775_v29  ;;  %vm2863_vm6 = vmor %vm1231_vm2, %vm1232_vm5 }
  0xc6   :  { %v1178_v61 = vsel %vm1177_vm4, %v1829_v43, %v1174_v50  ;;  %v2848_v24 = vadd.f32 %v2678_v5, %v2689_v31  ;;  %v1559_v36 = vmul.f32 %v1534_v27, %v1211_v18  ;;  %v1688_v28 = vadd.f32 %v1687_v14, %v2737_v8 }
  0xc7   :  { %v2850_v25 = vpop.eup %1832  ;;  %v1183_v26 = vsel %vm2803_vm0, %v1182_v3, %v1178_v61  ;;  %1840 = vrcp.f32 %v2840_v59  ;;  %v1249_v8 = vand.u32 2147483647, %v2810_v55  ;;  %v1251_v34 = vand.u32 2147483648, %v2810_v55 }
  0xc8   :  { %v1835_v11 = vpop.eup %1834  ;;  %v1557_v29 = vmul.f32 %v1532_v4, %v1183_v26  ;;  %v1241_v31 = vmul.f32 %v2850_v25, %v2810_v55  ;;  %v1234_v12 = vsel %vm2863_vm6, %v2797_v22, %v1230_v32  ;;  %vm1236_vm7 = vcmp.eq.f32.partialorder %v1235_v15, 8.507059e+37  ;;  %v51_v22 = vld [vmem:[%s4042_s0 + $0x40] sm:$0xff] }
  0xc9   :  { %v1837_v48 = vpop.eup %1836  ;;  %v1238_v35 = vor.u32 1.1754944e-38, %v1237_v62  ;;  %v277_v13 = vmul.f32 2.0, %v252_v63  ;;  %v2875_v27 = vmul.f32 %v1512_v17, %v1512_v17  ;;  %v1510_v37 = vsub.f32 %v935_v6, %v2346_v42  ;;  %v101_v42 = vld [vmem:[%s4044_s2 + $0x40] sm:$0xff] }
  0xca   :  { %v1839_v21 = vpop.eup %1838  ;;  %v1582_v47 = vsel %vm744_vm11, %v1557_v29, 0.0  ;;  %v1242_v38 = vsub.f32 1.0, %v1241_v31  ;;  %v1586_v60 = vsel %vm744_vm11, %v1559_v36, 0.0  ;;  %v1648_v44 = vmul.f32 0.6931472, %v1835_v11 }
  0xcb   :  { %vm1245_vm8 = vweird.f32 %v2810_v55  ;;  %v1689_v41 = vadd.f32 %v1688_v28, %v2799_v49  ;;  %v1239_v43 = vsel %vm1236_vm7, %v1238_v35, %v1234_v12  ;;  %vm2882_vm9 = vcmp.eq.f32.partialorder %v1249_v8, 8.507059e+37  ;;  %v1035_v8 = vpop.xlane.xlu1 %1034 }
  0xcc   :  { %v1243_v16 = vmul.f32 %v2850_v25, %v1242_v38  ;;  %v1252_v46 = vor.u32 1.1754944e-38, %v1251_v34  ;;  %v2892_v58 = vmul.f32 %v277_v13, %v252_v63  ;;  %v1583_v52 = vadd.f32 %v1582_v47, %v2785_v20  ;;  %v938_v47 = vld [vmem:[%s4049_s7 + $0x38] sm:$0xff] }
  0xcd   :  { %v1841_v49 = vpop.eup %1840  ;;  %v2895_v53 = vmul.f32 0.6931472, %v1837_v48  ;;  %v1646_v54 = vmul.f32 0.6931472, %v1839_v21  ;;  %v1089_v56 = vadd.f32 0.05, %v1032_v39  ;;  %vm1246_vm10 = vweird.f32 %v2850_v25 }
  0xce   :  { %v1244_v0 = vadd.f32 %v2850_v25, %v1243_v16  ;;  %v1213_v3 = vmul.f32 %v1841_v49, %v2840_v59  ;;  %v1535_v7 = vmul.f32 %v1510_v37, %v1510_v37  ;;  %v1561_v45 = vmul.f32 %v2795_v40, %v1239_v43  ;;  %vm2907_vm12 = vmor %vm1245_vm8, %vm1246_vm10 }
  0xcf   :  { %1842 = vrcp.f32 %v2892_v58  ;;  %v677_v23 = vsub.f32 %v101_v42, %v51_v22  ;;  %v1088_v15 = vadd.f32 0.05, %v1029_v51  ;;  %v1221_v20 = vand.u32 2147483647, %v2840_v59 }
  0xd0   :  { %v1214_v30 = vsub.f32 1.0, %v1213_v3  ;;  %v1223_v62 = vand.u32 2147483648, %v2840_v59  ;;  %v1114_v1 = vmul.f32 2.0, %v1089_v56  ;;  %v1585_v14 = vadd.f32 %v2832_v2, %v1583_v52  ;;  %v939_v2 = vld [vmem:[%s4049_s7 + $0x40] sm:$0xff] }
  0xd1   :  { %vm1217_vm13 = vweird.f32 %v2840_v59  ;;  %v1690_v40 = vadd.f32 %v1689_v41, %v1646_v54  ;;  %1844 = vlog2.f32 %v252_v63  ;;  %v1248_v9 = vsel %vm2907_vm12, %v2850_v25, %v1244_v0  ;;  %v201_v59 = vpop.xlane.xlu2 %200 }
  0xd2   :  { %v1215_v57 = vmul.f32 %v1841_v49, %v1214_v30  ;;  %vm1218_vm14 = vweird.f32 %v1841_v49  ;;  %v2918_v18 = vmul.f32 %v1114_v1, %v1089_v56  ;;  %v2921_v55 = vsel %vm744_vm11, %v1561_v45, 0.0 }
  0xd3   :  { %v440_v50 = vand.u32 2147483647, %v2892_v58  ;;  %v2924_v32 = vmul.f32 %v677_v23, %v677_v23  ;;  %v1113_v63 = vmul.f32 2.0, %v1088_v15  ;;  %vm1222_vm15 = vcmp.eq.f32.partialorder %v1221_v20, 8.507059e+37  ;;  %vm1219_vm0 = vmor %vm1217_vm13, %vm1218_vm14  ;;  %v2978_v23 = vld [vmem:[%s4042_s0 + $0x48] sm:$0xff] }
  0xd4   :  { %v1216_v61 = vadd.f32 %v1841_v49, %v1215_v57  ;;  %v1224_v17 = vor.u32 1.1754944e-38, %v1223_v62  ;;  %1846 = vrcp.f32 %v2918_v18  ;;  %v1253_v36 = vsel %vm2882_vm9, %v1252_v46, %v1248_v9 }
  0xd5   :  { %v1843_v25 = vpop.eup %1842  ;;  %v442_v26 = vand.u32 2147483648, %v2892_v58  ;;  %v1514_v28 = vsub.f32 %v939_v2, %v51_v22  ;;  %v2932_v6 = vmul.f32 %v1113_v63, %v1088_v15  ;;  %v1587_v29 = vadd.f32 %v1586_v60, %v1585_v14 }
  0xd6   :  { %v1220_v11 = vsel %vm1219_vm0, %v1841_v49, %v1216_v61  ;;  %v1691_v5 = vadd.f32 %v1690_v40, %v1648_v44  ;;  %v432_v31 = vmul.f32 %v1843_v25, %v2892_v58  ;;  %vm436_vm1 = vweird.f32 %v2892_v58  ;;  %v940_v58 = vld [vmem:[%s4049_s7 + $0x48] sm:$0xff] }
  0xd7   :  { %v1845_v34 = vpop.eup %1844  ;;  %v1225_v48 = vsel %vm1222_vm15, %v1224_v17, %v1220_v11  ;;  %vm2936_vm2 = vcmp.eq.f32.partialorder %v440_v50, 8.507059e+37  ;;  %1848 = vrcp.f32 %v2932_v6  ;;  %v1562_v35 = vmul.f32 %v2875_v27, %v1253_v36 }
  0xd8   :  { %v1560_v13 = vmul.f32 %v1535_v7, %v1225_v48  ;;  %v433_v21 = vsub.f32 1.0, %v432_v31  ;;  %1850 = vlog2.f32 %v1089_v56  ;;  %v443_v38 = vor.u32 1.1754944e-38, %v442_v26  ;;  %v198_v31 = vpop.xlane.xlu0 %197 }
  0xd9   :  { %v2945_v37 = vmul.f32 %v1514_v28, %v1514_v28  ;;  %1852 = vlog2.f32 %v1088_v15  ;;  %v1090_v39 = vadd.f32 0.05, %v1035_v8  ;;  %vm437_vm3 = vweird.f32 %v1843_v25 }
  0xda   :  { %v2947_v60 = vpop.eup %1846  ;;  %v1588_v44 = vsel %vm744_vm11, %v1560_v13, 0.0  ;;  %v434_v41 = vmul.f32 %v1843_v25, %v433_v21  ;;  %v2950_v43 = vadd.f32 0.05, %v201_v59  ;;  %v2952_v27 = vmul.f32 0.6931472, %v1845_v34  ;;  %vm2962_vm5 = vmor %vm436_vm1, %vm437_vm3  ;;  %v204_v21 = vpop.xlane.xlu1 %203 }
  0xdb   :  { %v1269_v16 = vmul.f32 %v2947_v60, %v2918_v18  ;;  %v1692_v4 = vadd.f32 %v1691_v5, %v2895_v53  ;;  %v1513_v46 = vsub.f32 %v938_v47, %v2557_v10  ;;  %v1592_v42 = vsel %vm744_vm11, %v1562_v35, 0.0 }
  0xdc   :  { %v435_v22 = vadd.f32 %v1843_v25, %v434_v41  ;;  %vm1273_vm4 = vweird.f32 %v2918_v18  ;;  %v1115_v51 = vmul.f32 2.0, %v1090_v39  ;;  %v1589_v52 = vadd.f32 %v1588_v44, %v1587_v29 }
  0xdd   :  { %v1849_v49 = vpop.eup %1848  ;;  %v1270_v56 = vsub.f32 1.0, %v1269_v16  ;;  %v1277_v0 = vand.u32 2147483647, %v2918_v18  ;;  %v279_v53 = vmul.f32 2.0, %v2950_v43  ;;  %v1279_v7 = vand.u32 2147483648, %v2918_v18 }
  0xde   :  { %v1851_v10 = vpop.eup %1850  ;;  %v439_v3 = vsel %vm2962_vm5, %v1843_v25, %v435_v22  ;;  %v1255_v45 = vmul.f32 %v1849_v49, %v2932_v6  ;;  %v2980_v15 = vmul.f32 %v1115_v51, %v1090_v39  ;;  %v1263_v62 = vand.u32 2147483647, %v2932_v6 }
  0xdf   :  { %v1853_v30 = vpop.eup %1852  ;;  %v1271_v20 = vmul.f32 %v2947_v60, %v1270_v56  ;;  %1854 = vlog2.f32 %v1090_v39  ;;  %v2985_v1 = vmul.f32 %v279_v53, %v2950_v43  ;;  %v444_v14 = vsel %vm2936_vm2, %v443_v38, %v439_v3 }
  0xe0   :  { %vm1274_vm6 = vweird.f32 %v2947_v60  ;;  %v1256_v33 = vsub.f32 1.0, %v1255_v45  ;;  %1856 = vrcp.f32 %v2980_v15  ;;  %v1591_v40 = vadd.f32 %v2921_v55, %v1589_v52  ;;  %v54_v45 = vld [vmem:[%s4042_s0 + $0x58] sm:$0xff] }
  0xe1   :  { %v1272_v9 = vadd.f32 %v2947_v60, %v1271_v20  ;;  %v1265_v57 = vand.u32 2147483648, %v2932_v6  ;;  %v1515_v2 = vsub.f32 %v940_v58, %v2978_v23  ;;  %vm1260_vm7 = vweird.f32 %v1849_v49  ;;  %vm2999_vm8 = vmor %vm1273_vm4, %vm1274_vm6 }
  0xe2   :  { %v1257_v50 = vmul.f32 %v1849_v49, %v1256_v33  ;;  %v1652_v63 = vmul.f32 0.6931472, %v1853_v30  ;;  %1858 = vrcp.f32 %v2985_v1  ;;  %v727_v61 = vmul.f32 %v2924_v32, %v444_v14  ;;  %v1041_v14 = vpop.xlane.xlu2 %1040 }
  0xe3   :  { %vm3003_vm9 = vcmp.eq.f32.partialorder %v1277_v0, 8.507059e+37  ;;  %vm1259_vm10 = vweird.f32 %v2932_v6  ;;  %v1538_v25 = vmul.f32 %v1513_v46, %v1513_v46  ;;  %v1276_v36 = vsel %vm2999_vm8, %v2947_v60, %v1272_v9  ;;  %v3031_v46 = vld [vmem:[%s4042_s0 + $0x50] sm:$0xff]  ;;  %v102_v0 = vld [vmem:[%s4044_s2 + $0x48] sm:$0xff] }
  0xe4   :  { %v1258_v26 = vadd.f32 %v1849_v49, %v1257_v50  ;;  %v1291_v32 = vand.u32 2147483647, %v2980_v15  ;;  %v1293_v18 = vand.u32 2147483648, %v2980_v15  ;;  %v1280_v11 = vor.u32 1.1754944e-38, %v1279_v7  ;;  %vm1261_vm12 = vmor %vm1259_vm10, %vm1260_vm7 }
  0xe5   :  { %v1855_v28 = vpop.eup %1854  ;;  %v1654_v29 = vmul.f32 0.6931472, %v1851_v10  ;;  %vm1264_vm13 = vcmp.eq.f32.partialorder %v1263_v62, 8.507059e+37  ;;  %v1266_v5 = vor.u32 1.1754944e-38, %v1265_v57  ;;  %v1593_v34 = vadd.f32 %v1592_v42, %v1591_v40 }
  0xe6   :  { %v1857_v8 = vpop.eup %1856  ;;  %v1262_v6 = vsel %vm1261_vm12, %v1849_v49, %v1258_v26  ;;  %v1693_v48 = vadd.f32 %v1692_v4, %v1652_v63  ;;  %v1540_v12 = vmul.f32 %v1515_v2, %v1515_v2  ;;  %v1281_v59 = vsel %vm3003_vm9, %v1280_v11, %v1276_v36  ;;  %v103_v4 = vld [vmem:[%s4044_s2 + $0x50] sm:$0xff]  ;;  %v1038_v63 = vpop.xlane.xlu0 %1037 }
  0xe7   :  { %v1267_v35 = vsel %vm1264_vm13, %v1266_v5, %v1262_v6  ;;  %v1283_v13 = vmul.f32 %v1857_v8, %v2980_v15  ;;  %vm1287_vm14 = vweird.f32 %v2980_v15  ;;  %v760_v38 = vsel %vm744_vm11, %v727_v61, 0.0 }
  0xe8   :  { %v3018_v47 = vpop.eup %1858  ;;  %vm3021_vm15 = vcmp.eq.f32.partialorder %v1291_v32, 8.507059e+37  ;;  %v1294_v60 = vor.u32 1.1754944e-38, %v1293_v18  ;;  %v1656_v44 = vmul.f32 0.6931472, %v1855_v28  ;;  %v1563_v41 = vmul.f32 %v1538_v25, %v1267_v35 }
  0xe9   :  { %v1284_v16 = vsub.f32 1.0, %v1283_v13  ;;  %v460_v42 = vmul.f32 %v3018_v47, %v2985_v1  ;;  %v253_v22 = vadd.f32 0.05, %v198_v31  ;;  %v1564_v51 = vmul.f32 %v2945_v37, %v1281_v59  ;;  %v104_v37 = vld [vmem:[%s4044_s2 + $0x58] sm:$0xff] }
  0xea   :  { %v1694_v49 = vadd.f32 %v1693_v48, %v1654_v29  ;;  %vm464_vm0 = vweird.f32 %v2985_v1  ;;  %v255_v52 = vadd.f32 0.05, %v204_v21  ;;  %vm1288_vm1 = vweird.f32 %v1857_v8  ;;  %v942_v31 = vld [vmem:[%s4049_s7 + $0x58] sm:$0xff] }
  0xeb   :  { %v1285_v54 = vmul.f32 %v1857_v8, %v1284_v16  ;;  %v461_v56 = vsub.f32 1.0, %v460_v42  ;;  %v278_v53 = vmul.f32 2.0, %v253_v22  ;;  %v468_v10 = vand.u32 2147483647, %v2985_v1  ;;  %vm1289_vm2 = vmor %vm1287_vm14, %vm1288_vm1  ;;  %v1044_v16 = vpop.xlane.xlu1 %1043 }
  0xec   :  { %v470_v3 = vand.u32 2147483648, %v2985_v1  ;;  %v679_v7 = vsub.f32 %v103_v4, %v3031_v46  ;;  %v280_v58 = vmul.f32 2.0, %v255_v52  ;;  %v1594_v30 = vsel %vm744_vm11, %v1563_v41, 0.0 }
  0xed   :  { %v1286_v20 = vadd.f32 %v1857_v8, %v1285_v54  ;;  %v462_v62 = vmul.f32 %v3018_v47, %v461_v56  ;;  %1860 = vlog2.f32 %v253_v22  ;;  %vm465_vm3 = vweird.f32 %v3018_v47 }
  0xee   :  { %1862 = vlog2.f32 %v2950_v43  ;;  %v3056_v33 = vmul.f32 %v278_v53, %v253_v22  ;;  %v3058_v40 = vmul.f32 %v280_v58, %v255_v52  ;;  %v678_v2 = vsub.f32 %v102_v0, %v2978_v23  ;;  %vm3076_vm4 = vmor %vm464_vm0, %vm465_vm3 }
  0xef   :  { %v1290_v9 = vsel %vm1289_vm2, %v1857_v8, %v1286_v20  ;;  %v463_v57 = vadd.f32 %v3018_v47, %v462_v62  ;;  %v680_v50 = vsub.f32 %v104_v37, %v54_v45  ;;  %v1595_v61 = vadd.f32 %v1594_v30, %v1593_v34 }
  0xf0   :  { %v1295_v15 = vsel %vm3021_vm15, %v1294_v60, %v1290_v9  ;;  %1864 = vrcp.f32 %v3056_v33  ;;  %v1092_v17 = vadd.f32 0.05, %v1041_v14  ;;  %v3066_v43 = vadd.f32 %v760_v38, %v2844_v19 }
  0xf1   :  { %v859_v55 = vadd.f32 %v2848_v24, %v2952_v27  ;;  %v3070_v25 = vadd.f32 %v1694_v49, %v1656_v44  ;;  %1866 = vrcp.f32 %v3058_v40  ;;  %v1596_v36 = vsel %vm744_vm11, %v1564_v51, 0.0 }
  0xf2   :  { %v1565_v26 = vmul.f32 %v1540_v12, %v1295_v15  ;;  %v467_v19 = vsel %vm3076_vm4, %v3018_v47, %v463_v57  ;;  %v1091_v24 = vadd.f32 0.05, %v1038_v63  ;;  %vm469_vm5 = vcmp.eq.f32.partialorder %v468_v10, 8.507059e+37  ;;  %v941_v10 = vld [vmem:[%s4049_s7 + $0x50] sm:$0xff] }
  0xf3   :  { %v1861_v27 = vpop.eup %1860  ;;  %v471_v32 = vor.u32 1.1754944e-38, %v470_v3  ;;  %v704_v18 = vmul.f32 %v679_v7, %v679_v7  ;;  %v3085_v28 = vmul.f32 %v678_v2, %v678_v2  ;;  %v1597_v11 = vadd.f32 %v1596_v36, %v1595_v61 }
  0xf4   :  { %v1863_v1 = vpop.eup %1862  ;;  %v454_v29 = vand.u32 2147483647, %v3056_v33  ;;  %v3088_v5 = vmul.f32 %v680_v50, %v680_v50  ;;  %v1117_v8 = vmul.f32 2.0, %v1092_v17  ;;  %v456_v34 = vand.u32 2147483648, %v3056_v33 }
  0xf5   :  { %v472_v6 = vsel %vm469_vm5, %v471_v32, %v467_v19  ;;  %v482_v48 = vand.u32 2147483647, %v3058_v40  ;;  %1868 = vlog2.f32 %v255_v52  ;;  %v1598_v59 = vsel %vm744_vm11, %v1565_v26, 0.0  ;;  %v943_v26 = vld [vmem:[%s4049_s7 + $0x60] sm:$0xff] }
  0xf6   :  { %v1865_v12 = vpop.eup %1864  ;;  %v821_v35 = vmul.f32 0.6931472, %v1861_v27  ;;  %v3096_v13 = vmul.f32 %v1117_v8, %v1092_v17  ;;  %v1116_v21 = vmul.f32 2.0, %v1091_v24  ;;  %v823_v38 = vmul.f32 0.6931472, %v1863_v1  ;;  %v3160_v19 = vld [vmem:[%s4042_s0 + $0x60] sm:$0xff] }
  0xf7   :  { %v3098_v47 = vpop.eup %1866  ;;  %v446_v39 = vmul.f32 %v1865_v12, %v3056_v33  ;;  %vm450_vm6 = vweird.f32 %v3056_v33  ;;  %v1517_v60 = vsub.f32 %v942_v31, %v54_v45  ;;  %vm3102_vm7 = vcmp.eq.f32.partialorder %v454_v29, 8.507059e+37 }
  0xf8   :  { %v474_v41 = vmul.f32 %v3098_v47, %v3058_v40  ;;  %vm478_vm8 = vweird.f32 %v3058_v40  ;;  %1870 = vrcp.f32 %v3096_v13  ;;  %v3110_v4 = vadd.f32 %v1598_v59, %v1597_v11 }
  0xf9   :  { %v729_v42 = vmul.f32 %v704_v18, %v472_v6  ;;  %v447_v22 = vsub.f32 1.0, %v446_v39  ;;  %v457_v51 = vor.u32 1.1754944e-38, %v456_v34  ;;  %v860_v49 = vadd.f32 %v859_v55, %v821_v35  ;;  %v210_v34 = vpop.xlane.xlu2 %209 }
  0xfa   :  { %v475_v52 = vsub.f32 1.0, %v474_v41  ;;  %vm3112_vm9 = vcmp.eq.f32.partialorder %v482_v48, 8.507059e+37  ;;  %v3116_v56 = vmul.f32 %v1116_v21, %v1091_v24  ;;  %vm451_vm10 = vweird.f32 %v1865_v12 }
  0xfb   :  { %v1869_v0 = vpop.eup %1868  ;;  %v448_v53 = vmul.f32 %v1865_v12, %v447_v22  ;;  %1872 = vlog2.f32 %v1092_v17  ;;  %v1093_v3 = vadd.f32 0.05, %v1044_v16  ;;  %vm479_vm12 = vweird.f32 %v3098_v47  ;;  %vm452_vm13 = vmor %vm450_vm6, %vm451_vm10 }
  0xfc   :  { %v476_v7 = vmul.f32 %v3098_v47, %v475_v52  ;;  %v484_v37 = vand.u32 2147483648, %v3058_v40  ;;  %1874 = vrcp.f32 %v3116_v56  ;;  %v3126_v45 = vsel %vm744_vm11, %v729_v42, 0.0  ;;  %vm3138_vm14 = vmor %vm478_vm8, %vm479_vm12 }
  0xfd   :  { %v449_v58 = vadd.f32 %v1865_v12, %v448_v53  ;;  %1876 = vlog2.f32 %v1091_v24  ;;  %v1118_v30 = vmul.f32 2.0, %v1093_v3  ;;  %v825_v14 = vmul.f32 0.6931472, %v1869_v0 }
  0xfe   :  { %v3128_v20 = vpop.eup %1870  ;;  %v477_v62 = vadd.f32 %v3098_v47, %v476_v7  ;;  %v3133_v9 = vmul.f32 %v1517_v60, %v1517_v60  ;;  %v1516_v57 = vsub.f32 %v941_v10, %v3031_v46  ;;  %v861_v63 = vadd.f32 %v860_v49, %v823_v38 }
  0xff   :  { %v453_v2 = vsel %vm452_vm13, %v1865_v12, %v449_v58  ;;  %v1311_v61 = vmul.f32 %v3128_v20, %v3096_v13  ;;  %v1319_v33 = vand.u32 2147483647, %v3096_v13  ;;  %v1321_v17 = vand.u32 2147483648, %v3096_v13 }
 0x100   :  { %v458_v15 = vsel %vm3102_vm7, %v457_v51, %v453_v2  ;;  %v481_v46 = vsel %vm3138_vm14, %v3098_v47, %v477_v62  ;;  %v3151_v40 = vmul.f32 %v1118_v30, %v1093_v3  ;;  %v485_v23 = vor.u32 1.1754944e-38, %v484_v37 }
 0x101   :  { %v1873_v55 = vpop.eup %1872  ;;  %v1312_v36 = vsub.f32 1.0, %v1311_v61  ;;  %vm1315_vm15 = vweird.f32 %v3096_v13  ;;  %1878 = vlog2.f32 %v1093_v3  ;;  %v3162_v27 = vadd.f32 %v861_v63, %v825_v14 }
 0x102   :  { %v1875_v24 = vpop.eup %1874  ;;  %v1305_v32 = vand.u32 2147483647, %v3116_v56  ;;  %v1541_v18 = vmul.f32 %v1516_v57, %v1516_v57  ;;  %1880 = vrcp.f32 %v3151_v40  ;;  %v728_v11 = vmul.f32 %v3085_v28, %v458_v15  ;;  %v207_v28 = vpop.xlane.xlu0 %206  ;;  %v106_v57 = vld [vmem:[%s4044_s2 + $0x68] sm:$0xff] }
 0x103   :  { %v1877_v1 = vpop.eup %1876  ;;  %v486_v29 = vsel %vm3112_vm9, %v485_v23, %v481_v46  ;;  %v1313_v31 = vmul.f32 %v3128_v20, %v1312_v36  ;;  %vm3170_vm0 = vcmp.eq.f32.partialorder %v1319_v33, 8.507059e+37  ;;  %v1297_v6 = vmul.f32 %v1875_v24, %v3116_v56  ;;  %v105_v36 = vld [vmem:[%s4044_s2 + $0x60] sm:$0xff] }
 0x104   :  { %v1322_v48 = vor.u32 1.1754944e-38, %v1321_v17  ;;  %vm1301_vm1 = vweird.f32 %v3116_v56  ;;  %v1307_v12 = vand.u32 2147483648, %v3116_v56  ;;  %v1518_v59 = vsub.f32 %v943_v26, %v3160_v19  ;;  %v213_v56 = vpop.xlane.xlu1 %212 }
 0x105   :  { %v1314_v35 = vadd.f32 %v3128_v20, %v1313_v31  ;;  %vm1316_vm2 = vweird.f32 %v3128_v20  ;;  %v1660_v21 = vmul.f32 0.6931472, %v1873_v55  ;;  %v1298_v47 = vsub.f32 1.0, %v1297_v6 }
 0x106   :  { %v730_v38 = vmul.f32 %v3088_v5, %v486_v29  ;;  %vm3181_vm3 = vcmp.eq.f32.partialorder %v1305_v32, 8.507059e+37  ;;  %v1658_v60 = vmul.f32 0.6931472, %v1877_v1  ;;  %v257_v44 = vadd.f32 0.05, %v210_v34  ;;  %vm3188_vm5 = vmor %vm1315_vm15, %vm1316_vm2  ;;  %v1050_v29 = vpop.xlane.xlu2 %1049 }
 0x107   :  { %v1879_v41 = vpop.eup %1878  ;;  %v762_v16 = vsel %vm744_vm11, %v728_v11, 0.0  ;;  %v1299_v42 = vmul.f32 %v1875_v24, %v1298_v47  ;;  %vm1302_vm4 = vweird.f32 %v1875_v24  ;;  %v256_v22 = vadd.f32 0.05, %v207_v28 }
 0x108   :  { %v1881_v51 = vpop.eup %1880  ;;  %v1308_v5 = vor.u32 1.1754944e-38, %v1307_v12  ;;  %vm1329_vm6 = vweird.f32 %v3151_v40  ;;  %v1543_v52 = vmul.f32 %v1518_v59, %v1518_v59  ;;  %v282_v54 = vmul.f32 2.0, %v257_v44  ;;  %vm1303_vm7 = vmor %vm1301_vm1, %vm1302_vm4  ;;  %v107_v59 = vld [vmem:[%s4044_s2 + $0x70] sm:$0xff] }
 0x109   :  { %v1318_v0 = vsel %vm3188_vm5, %v3128_v20, %v1314_v35  ;;  %v1300_v53 = vadd.f32 %v1875_v24, %v1299_v42  ;;  %v1325_v10 = vmul.f32 %v1881_v51, %v3151_v40  ;;  %v1333_v3 = vand.u32 2147483647, %v3151_v40 }
 0x10a   :  { %v763_v13 = vadd.f32 %v762_v16, %v3066_v43  ;;  %v766_v7 = vsel %vm744_vm11, %v730_v38, 0.0  ;;  %v3202_v37 = vmul.f32 %v282_v54, %v257_v44  ;;  %v281_v58 = vmul.f32 2.0, %v256_v22  ;;  %v3212_v43 = vld [vmem:[%s4042_s0 + $0x68] sm:$0xff] }
 0x10b   :  { %v1304_v30 = vsel %vm1303_vm7, %v1875_v24, %v1300_v53  ;;  %v1696_v62 = vadd.f32 %v3070_v25, %v1658_v60  ;;  %v1326_v14 = vsub.f32 1.0, %v1325_v10  ;;  %v1335_v20 = vand.u32 2147483648, %v3151_v40  ;;  %v945_v10 = vld [vmem:[%s4049_s7 + $0x70] sm:$0xff] }
 0x10c   :  { %v1323_v2 = vsel %vm3170_vm0, %v1322_v48, %v1318_v0  ;;  %v1309_v50 = vsel %vm3181_vm3, %v1308_v5, %v1304_v30  ;;  %v1662_v25 = vmul.f32 0.6931472, %v1879_v41  ;;  %1882 = vrcp.f32 %v3202_v37 }
 0x10d   :  { %v1566_v63 = vmul.f32 %v1541_v18, %v1309_v50  ;;  %v1327_v61 = vmul.f32 %v1881_v51, %v1326_v14  ;;  %vm1330_vm8 = vweird.f32 %v1881_v51  ;;  %v3219_v33 = vmul.f32 %v281_v58, %v256_v22 }
 0x10e   :  { %v765_v15 = vadd.f32 %v3126_v45, %v763_v13  ;;  %v682_v46 = vsub.f32 %v106_v57, %v3212_v43  ;;  %1884 = vlog2.f32 %v257_v44  ;;  %v258_v17 = vadd.f32 0.05, %v213_v56  ;;  %vm1331_vm10 = vmor %vm1329_vm6, %vm1330_vm8  ;;  %v1047_v13 = vpop.xlane.xlu0 %1046  ;;  %v1053_v57 = vpop.xlane.xlu1 %1052 }
 0x10f   :  { %v1328_v55 = vadd.f32 %v1881_v51, %v1327_v61  ;;  %vm1334_vm9 = vcmp.eq.f32.partialorder %v1333_v3, 8.507059e+37  ;;  %v1697_v23 = vadd.f32 %v1696_v62, %v1660_v21  ;;  %1886 = vrcp.f32 %v3219_v33 }
 0x110   :  { %v3227_v26 = vadd.f32 %v766_v7, %v765_v15  ;;  %v1567_v24 = vmul.f32 %v3133_v9, %v1323_v2  ;;  %v1600_v32 = vsel %vm744_vm11, %v1566_v63, 0.0  ;;  %v1336_v45 = vor.u32 1.1754944e-38, %v1335_v20 }
 0x111   :  { %v1332_v18 = vsel %vm1331_vm10, %v1881_v51, %v1328_v55  ;;  %v3233_v1 = vadd.f32 %v1697_v23, %v1662_v25  ;;  %1888 = vlog2.f32 %v256_v22  ;;  %v283_v11 = vmul.f32 2.0, %v258_v17 }
 0x112   :  { %v3235_v31 = vpop.eup %1882  ;;  %v1337_v8 = vsel %vm1334_vm9, %v1336_v45, %v1332_v18  ;;  %v512_v6 = vand.u32 2147483648, %v3202_v37  ;;  %v3238_v34 = vmul.f32 %v682_v46, %v682_v46  ;;  %v681_v9 = vsub.f32 %v105_v36, %v3160_v19 }
 0x113   :  { %v1601_v48 = vadd.f32 %v1600_v32, %v3110_v4  ;;  %v502_v40 = vmul.f32 %v3235_v31, %v3202_v37  ;;  %v510_v12 = vand.u32 2147483647, %v3202_v37  ;;  %v3248_v28 = vmul.f32 %v283_v11, %v258_v17  ;;  %v57_v4 = vld [vmem:[%s4042_s0 + $0x70] sm:$0xff] }
 0x114   :  { %v1885_v35 = vpop.eup %1884  ;;  %v1602_v21 = vsel %vm744_vm11, %v1567_v24, 0.0  ;;  %vm506_vm12 = vweird.f32 %v3202_v37  ;;  %v496_v19 = vand.u32 2147483647, %v3219_v33  ;;  %v1095_v47 = vadd.f32 0.05, %v1050_v29  ;;  %v944_v29 = vld [vmem:[%s4049_s7 + $0x68] sm:$0xff] }
 0x115   :  { %v1887_v38 = vpop.eup %1886  ;;  %v1568_v39 = vmul.f32 %v1543_v52, %v1337_v8  ;;  %v503_v60 = vsub.f32 1.0, %v502_v40  ;;  %v498_v44 = vand.u32 2147483648, %v3219_v33  ;;  %1890 = vrcp.f32 %v3248_v28 }
 0x116   :  { %v513_v41 = vor.u32 1.1754944e-38, %v512_v6  ;;  %v488_v16 = vmul.f32 %v1887_v38, %v3219_v33  ;;  %vm492_vm13 = vweird.f32 %v3219_v33  ;;  %v706_v42 = vmul.f32 %v681_v9, %v681_v9  ;;  %v946_v9 = vld [vmem:[%s4049_s7 + $0x78] sm:$0xff] }
 0x117   :  { %v1889_v22 = vpop.eup %1888  ;;  %v1603_v51 = vadd.f32 %v1602_v21, %v1601_v48  ;;  %v504_v49 = vmul.f32 %v3235_v31, %v503_v60  ;;  %vm3261_vm14 = vcmp.eq.f32.partialorder %v510_v12, 8.507059e+37  ;;  %v829_v52 = vmul.f32 0.6931472, %v1885_v35  ;;  %v3316_v48 = vld [vmem:[%s4042_s0 + $0x78] sm:$0xff] }
 0x118   :  { %v683_v54 = vsub.f32 %v107_v59, %v57_v4  ;;  %v489_v0 = vsub.f32 1.0, %v488_v16  ;;  %vm3265_vm15 = vcmp.eq.f32.partialorder %v496_v19, 8.507059e+37  ;;  %1892 = vlog2.f32 %v258_v17 }
 0x119   :  { %v1120_v3 = vmul.f32 2.0, %v1095_v47  ;;  %v1604_v7 = vsel %vm744_vm11, %v1568_v39, 0.0  ;;  %v505_v58 = vadd.f32 %v3235_v31, %v504_v49  ;;  %vm507_vm0 = vweird.f32 %v3235_v31 }
 0x11a   :  { %v499_v30 = vor.u32 1.1754944e-38, %v498_v44  ;;  %v490_v62 = vmul.f32 %v1887_v38, %v489_v0  ;;  %vm493_vm1 = vweird.f32 %v1887_v38  ;;  %v827_v14 = vmul.f32 0.6931472, %v1889_v22  ;;  %vm3282_vm2 = vmor %vm506_vm12, %vm507_vm0  ;;  %v219_v44 = vpop.xlane.xlu2 %218 }
 0x11b   :  { %v3275_v20 = vmul.f32 %v1120_v3, %v1095_v47  ;;  %v1891_v56 = vpop.eup %1890  ;;  %v524_v2 = vand.u32 2147483647, %v3248_v28  ;;  %v708_v50 = vmul.f32 %v683_v54, %v683_v54  ;;  %v1520_v25 = vsub.f32 %v945_v10, %v57_v4  ;;  %vm494_vm4 = vmor %vm492_vm13, %vm493_vm1 }
 0x11c   :  { %v1094_v63 = vadd.f32 0.05, %v1047_v13  ;;  %v3278_v61 = vadd.f32 %v1604_v7, %v1603_v51  ;;  %v491_v46 = vadd.f32 %v1887_v38, %v490_v62  ;;  %v516_v17 = vmul.f32 %v1891_v56, %v3248_v28 }
 0x11d   :  { %vm520_vm3 = vweird.f32 %v3248_v28  ;;  %v509_v55 = vsel %vm3282_vm2, %v3235_v31, %v505_v58  ;;  %v526_v23 = vand.u32 2147483648, %v3248_v28  ;;  %1894 = vrcp.f32 %v3275_v20 }
 0x11e   :  { %v1096_v37 = vadd.f32 0.05, %v1053_v57  ;;  %v1893_v36 = vpop.eup %1892  ;;  %v495_v24 = vsel %vm494_vm4, %v1887_v38, %v491_v46  ;;  %v863_v32 = vadd.f32 %v3162_v27, %v827_v14  ;;  %v517_v45 = vsub.f32 1.0, %v516_v17 }
 0x11f   :  { %1896 = vlog2.f32 %v1095_v47  ;;  %v500_v18 = vsel %vm3265_vm15, %v499_v30, %v495_v24  ;;  %vm3299_vm5 = vcmp.eq.f32.partialorder %v524_v2, 8.507059e+37  ;;  %v3303_v33 = vmul.f32 %v1520_v25, %v1520_v25 }
 0x120   :  { %v1119_v31 = vmul.f32 2.0, %v1094_v63  ;;  %v514_v8 = vsel %vm3261_vm14, %v513_v41, %v509_v55  ;;  %v731_v27 = vmul.f32 %v706_v42, %v500_v18  ;;  %v518_v6 = vmul.f32 %v1891_v56, %v517_v45 }
 0x121   :  { %vm521_vm6 = vweird.f32 %v1891_v56  ;;  %v527_v40 = vor.u32 1.1754944e-38, %v526_v23  ;;  %v831_v12 = vmul.f32 0.6931472, %v1893_v36  ;;  %v1121_v35 = vmul.f32 2.0, %v1096_v37 }
 0x122   :  { %v3318_v59 = vmul.f32 %v1119_v31, %v1094_v63  ;;  %v519_v21 = vadd.f32 %v1891_v56, %v518_v6  ;;  %v864_v19 = vadd.f32 %v863_v32, %v829_v52  ;;  %v1519_v4 = vsub.f32 %v944_v29, %v3212_v43  ;;  %vm522_vm7 = vmor %vm520_vm3, %vm521_vm6  ;;  %v222_v6 = vpop.xlane.xlu1 %221 }
 0x123   :  { %1898 = vlog2.f32 %v1094_v63  ;;  %v3321_v47 = vpop.eup %1894  ;;  %v732_v38 = vmul.f32 %v3238_v34, %v514_v8  ;;  %v768_v39 = vsel %vm744_vm11, %v731_v27, 0.0  ;;  %v1521_v60 = vsub.f32 %v946_v9, %v3316_v48  ;;  %v3387_v27 = vld [vmem:[%s4042_s0 + $0x80] sm:$0xff] }
 0x124   :  { %1900 = vrcp.f32 %v3318_v59  ;;  %v523_v16 = vsel %vm522_vm7, %v1891_v56, %v519_v21  ;;  %v1353_v43 = vmul.f32 %v3321_v47, %v3275_v20  ;;  %v1361_v42 = vand.u32 2147483647, %v3275_v20  ;;  %v216_v56 = vpop.xlane.xlu0 %215 }
 0x125   :  { %v1897_v41 = vpop.eup %1896  ;;  %v1363_v22 = vand.u32 2147483648, %v3275_v20  ;;  %v528_v34 = vsel %vm3299_vm5, %v527_v40, %v523_v16  ;;  %v3335_v51 = vadd.f32 %v864_v19, %v831_v12  ;;  %v3337_v28 = vmul.f32 %v1121_v35, %v1096_v37 }
 0x126   :  { %1902 = vlog2.f32 %v1096_v37  ;;  %v769_v49 = vadd.f32 %v768_v39, %v3227_v26  ;;  %v733_v5 = vmul.f32 %v708_v50, %v528_v34  ;;  %v1354_v52 = vsub.f32 1.0, %v1353_v43 }
 0x127   :  { %v260_v54 = vadd.f32 0.05, %v219_v44  ;;  %v770_v0 = vsel %vm744_vm11, %v732_v38, 0.0  ;;  %vm1357_vm8 = vweird.f32 %v3275_v20  ;;  %v1666_v53 = vmul.f32 0.6931472, %v1897_v41  ;;  %v109_v20 = vld [vmem:[%s4044_s2 + $0x80] sm:$0xff] }
 0x128   :  { %1904 = vrcp.f32 %v3337_v28  ;;  %v1355_v3 = vmul.f32 %v3321_v47, %v1354_v52  ;;  %vm3344_vm9 = vcmp.eq.f32.partialorder %v1361_v42, 8.507059e+37  ;;  %v1364_v7 = vor.u32 1.1754944e-38, %v1363_v22 }
 0x129   :  { %v1899_v10 = vpop.eup %1898  ;;  %v1347_v26 = vand.u32 2147483647, %v3318_v59  ;;  %v285_v58 = vmul.f32 2.0, %v260_v54  ;;  %vm1358_vm10 = vweird.f32 %v3321_v47  ;;  %v1349_v62 = vand.u32 2147483648, %v3318_v59 }
 0x12a   :  { %v1901_v30 = vpop.eup %1900  ;;  %v1544_v14 = vmul.f32 %v1519_v4, %v1519_v4  ;;  %v3351_v57 = vmul.f32 %v1521_v60, %v1521_v60  ;;  %v771_v2 = vadd.f32 %v770_v0, %v769_v49  ;;  %v772_v50 = vsel %vm744_vm11, %v733_v5, 0.0  ;;  %vm3371_vm14 = vmor %vm1357_vm8, %vm1358_vm10  ;;  %v108_v4 = vld [vmem:[%s4044_s2 + $0x78] sm:$0xff] }
 0x12b   :  { %v1356_v25 = vadd.f32 %v3321_v47, %v1355_v3  ;;  %v1339_v63 = vmul.f32 %v1901_v30, %v3318_v59  ;;  %v1664_v46 = vmul.f32 0.6931472, %v1899_v10  ;;  %v1375_v17 = vand.u32 2147483647, %v3337_v28 }
 0x12c   :  { %v1903_v15 = vpop.eup %1902  ;;  %v1377_v55 = vand.u32 2147483648, %v3337_v28  ;;  %v3358_v23 = vmul.f32 %v285_v58, %v260_v54  ;;  %vm1343_vm12 = vweird.f32 %v3318_v59  ;;  %vm3361_vm13 = vcmp.eq.f32.partialorder %v1347_v26, 8.507059e+37 }
 0x12d   :  { %v1340_v37 = vsub.f32 1.0, %v1339_v63  ;;  %v259_v24 = vadd.f32 0.05, %v216_v56  ;;  %v3365_v45 = vadd.f32 %v772_v50, %v771_v2  ;;  %v1350_v11 = vor.u32 1.1754944e-38, %v1349_v62  ;;  %v60_v56 = vld [vmem:[%s4042_s0 + $0x88] sm:$0xff] }
 0x12e   :  { %v1905_v32 = vpop.eup %1904  ;;  %vm1371_vm15 = vweird.f32 %v3337_v28  ;;  %1906 = vrcp.f32 %v3358_v23  ;;  %v1360_v29 = vsel %vm3371_vm14, %v3321_v47, %v1356_v25  ;;  %vm1344_vm0 = vweird.f32 %v1901_v30 }
 0x12f   :  { %v1341_v31 = vmul.f32 %v1901_v30, %v1340_v37  ;;  %v1367_v8 = vmul.f32 %v1905_v32, %v3337_v28  ;;  %v1699_v9 = vadd.f32 %v3233_v1, %v1664_v46  ;;  %vm3390_vm1 = vcmp.eq.f32.partialorder %v1375_v17, 8.507059e+37  ;;  %vm1345_vm2 = vmor %vm1343_vm12, %vm1344_vm0  ;;  %v1059_v46 = vpop.xlane.xlu2 %1058  ;;  %v1056_v17 = vpop.xlane.xlu0 %1055 }
 0x130   :  { %v1378_v12 = vor.u32 1.1754944e-38, %v1377_v55  ;;  %v1668_v35 = vmul.f32 0.6931472, %v1903_v15  ;;  %1908 = vlog2.f32 %v260_v54  ;;  %v284_v47 = vmul.f32 2.0, %v259_v24 }
 0x131   :  { %v1342_v21 = vadd.f32 %v1901_v30, %v1341_v31  ;;  %v1368_v19 = vsub.f32 1.0, %v1367_v8  ;;  %v1365_v38 = vsel %vm3344_vm9, %v1364_v7, %v1360_v29  ;;  %v685_v1 = vsub.f32 %v109_v20, %v3387_v27 }
 0x132   :  { %1910 = vlog2.f32 %v259_v24  ;;  %v261_v39 = vadd.f32 0.05, %v222_v6  ;;  %vm1372_vm3 = vweird.f32 %v1905_v32  ;;  %v3403_v41 = vmul.f32 %v284_v47, %v259_v24 }
 0x133   :  { %v1346_v60 = vsel %vm1345_vm2, %v1901_v30, %v1342_v21  ;;  %v1369_v44 = vmul.f32 %v1905_v32, %v1368_v19  ;;  %v1700_v42 = vadd.f32 %v1699_v9, %v1666_v53  ;;  %v684_v22 = vsub.f32 %v108_v4, %v3316_v48  ;;  %vm1373_vm5 = vmor %vm1371_vm15, %vm1372_vm3 }
 0x134   :  { %v3405_v16 = vpop.eup %1906  ;;  %v1351_v43 = vsel %vm3361_vm13, %v1350_v11, %v1346_v60  ;;  %v286_v34 = vmul.f32 2.0, %v261_v39  ;;  %vm548_vm4 = vweird.f32 %v3358_v23  ;;  %v1570_v52 = vmul.f32 %v3303_v33, %v1365_v38 }
 0x135   :  { %v1569_v59 = vmul.f32 %v1544_v14, %v1351_v43  ;;  %v1370_v49 = vadd.f32 %v1905_v32, %v1369_v44  ;;  %v544_v5 = vmul.f32 %v3405_v16, %v3358_v23  ;;  %v552_v54 = vand.u32 2147483647, %v3358_v23  ;;  %v110_v14 = vld [vmem:[%s4044_s2 + $0x88] sm:$0xff] }
 0x136   :  { %v554_v0 = vand.u32 2147483648, %v3358_v23  ;;  %1912 = vrcp.f32 %v3403_v41  ;;  %v1909_v48 = vpop.eup %1908  ;;  %v3420_v13 = vmul.f32 %v286_v34, %v261_v39  ;;  %v538_v28 = vand.u32 2147483647, %v3403_v41  ;;  %v947_v34 = vld [vmem:[%s4049_s7 + $0x80] sm:$0xff] }
 0x137   :  { %v1606_v53 = vsel %vm744_vm11, %v1569_v59, 0.0  ;;  %v1374_v10 = vsel %vm1373_vm5, %v1905_v32, %v1370_v49  ;;  %v545_v3 = vsub.f32 1.0, %v544_v5  ;;  %v540_v26 = vand.u32 2147483648, %v3403_v41 }
 0x138   :  { %v1911_v7 = vpop.eup %1910  ;;  %v1379_v33 = vsel %vm3390_vm1, %v1378_v12, %v1374_v10  ;;  %1914 = vlog2.f32 %v261_v39  ;;  %v1607_v58 = vadd.f32 %v1606_v53, %v3278_v61  ;;  %v1608_v2 = vsel %vm744_vm11, %v1570_v52, 0.0  ;;  %v1062_v39 = vpop.xlane.xlu1 %1061 }
 0x139   :  { %v1571_v30 = vmul.f32 %v3351_v57, %v1379_v33  ;;  %v546_v62 = vmul.f32 %v3405_v16, %v545_v3  ;;  %1916 = vrcp.f32 %v3420_v13  ;;  %v3437_v50 = vadd.f32 %v1700_v42, %v1668_v35  ;;  %v949_v33 = vld [vmem:[%s4049_s7 + $0x90] sm:$0xff] }
 0x13a   :  { %vm3439_vm6 = vcmp.eq.f32.partialorder %v552_v54, 8.507059e+37  ;;  %v710_v57 = vmul.f32 %v685_v1, %v685_v1  ;;  %vm549_vm7 = vweird.f32 %v3405_v16  ;;  %v555_v63 = vor.u32 1.1754944e-38, %v554_v0 }
 0x13b   :  { %v547_v25 = vadd.f32 %v3405_v16, %v546_v62  ;;  %v833_v15 = vmul.f32 0.6931472, %v1911_v7  ;;  %v835_v37 = vmul.f32 0.6931472, %v1909_v48  ;;  %vm534_vm8 = vweird.f32 %v3403_v41  ;;  %vm3456_vm10 = vmor %vm548_vm4, %vm549_vm7  ;;  %v111_v7 = vld [vmem:[%s4044_s2 + $0x90] sm:$0xff] }
 0x13c   :  { %v1913_v55 = vpop.eup %1912  ;;  %v709_v36 = vmul.f32 %v684_v22, %v684_v22  ;;  %v686_v24 = vsub.f32 %v110_v14, %v60_v56  ;;  %v1609_v32 = vadd.f32 %v1608_v2, %v1607_v58  ;;  %v1610_v18 = vsel %vm744_vm11, %v1571_v30, 0.0 }
 0x13d   :  { %v530_v11 = vmul.f32 %v1913_v55, %v3403_v41  ;;  %vm3448_vm9 = vcmp.eq.f32.partialorder %v538_v28, 8.507059e+37  ;;  %v541_v31 = vor.u32 1.1754944e-38, %v540_v26  ;;  %vm562_vm12 = vweird.f32 %v3420_v13  ;;  %v3501_v28 = vld [vmem:[%s4042_s0 + $0x90] sm:$0xff] }
 0x13e   :  { %v1915_v8 = vpop.eup %1914  ;;  %v566_v6 = vand.u32 2147483647, %v3420_v13  ;;  %v1098_v9 = vadd.f32 0.05, %v1059_v46  ;;  %v1097_v40 = vadd.f32 0.05, %v1056_v17  ;;  %v551_v35 = vsel %vm3456_vm10, %v3405_v16, %v547_v25  ;;  %v228_v25 = vpop.xlane.xlu2 %227 }
 0x13f   :  { %v1917_v12 = vpop.eup %1916  ;;  %v531_v21 = vsub.f32 1.0, %v530_v11  ;;  %v866_v19 = vadd.f32 %v3335_v51, %v833_v15  ;;  %v568_v23 = vand.u32 2147483648, %v3420_v13  ;;  %v3467_v4 = vadd.f32 %v1610_v18, %v1609_v32  ;;  %v948_v16 = vld [vmem:[%s4049_s7 + $0x88] sm:$0xff] }
 0x140   :  { %v558_v47 = vmul.f32 %v1917_v12, %v3420_v13  ;;  %v3470_v38 = vmul.f32 %v686_v24, %v686_v24  ;;  %v1123_v1 = vmul.f32 2.0, %v1098_v9  ;;  %vm535_vm13 = vweird.f32 %v1913_v55 }
 0x141   :  { %v532_v60 = vmul.f32 %v1913_v55, %v531_v21  ;;  %v837_v44 = vmul.f32 0.6931472, %v1915_v8  ;;  %v1122_v43 = vmul.f32 2.0, %v1097_v40  ;;  %v556_v51 = vsel %vm3439_vm6, %v555_v63, %v551_v35  ;;  %vm536_vm14 = vmor %vm534_vm8, %vm535_vm13  ;;  %v225_v35 = vpop.xlane.xlu0 %224 }
 0x142   :  { %v559_v42 = vsub.f32 1.0, %v558_v47  ;;  %v3477_v22 = vmul.f32 %v1123_v1, %v1098_v9  ;;  %1918 = vlog2.f32 %v1098_v9  ;;  %v1099_v5 = vadd.f32 0.05, %v1062_v39 }
 0x143   :  { %v533_v59 = vadd.f32 %v1913_v55, %v532_v60  ;;  %v3482_v49 = vmul.f32 %v1122_v43, %v1097_v40  ;;  %1920 = vlog2.f32 %v1097_v40  ;;  %vm563_vm15 = vweird.f32 %v1917_v12 }
 0x144   :  { %v560_v52 = vmul.f32 %v1917_v12, %v559_v42  ;;  %1922 = vrcp.f32 %v3477_v22  ;;  %v1523_v54 = vsub.f32 %v948_v16, %v60_v56  ;;  %v735_v0 = vmul.f32 %v710_v57, %v556_v51  ;;  %vm3505_vm1 = vmor %vm562_vm12, %vm563_vm15 }
 0x145   :  { %v537_v48 = vsel %vm536_vm14, %v1913_v55, %v533_v59  ;;  %1924 = vrcp.f32 %v3482_v49  ;;  %v1522_v53 = vsub.f32 %v947_v34, %v3387_v27  ;;  %vm3491_vm0 = vcmp.eq.f32.partialorder %v566_v6, 8.507059e+37 }
 0x146   :  { %v542_v10 = vsel %vm3448_vm9, %v541_v31, %v537_v48  ;;  %v561_v3 = vadd.f32 %v1917_v12, %v560_v52  ;;  %v867_v41 = vadd.f32 %v866_v19, %v835_v37  ;;  %v569_v58 = vor.u32 1.1754944e-38, %v568_v23 }
 0x147   :  { %v734_v26 = vmul.f32 %v709_v36, %v542_v10  ;;  %v1403_v30 = vand.u32 2147483647, %v3477_v22  ;;  %v1124_v62 = vmul.f32 2.0, %v1099_v5  ;;  %v1405_v61 = vand.u32 2147483648, %v3477_v22 }
 0x148   :  { %v1919_v14 = vpop.eup %1918  ;;  %v565_v56 = vsel %vm3505_vm1, %v1917_v12, %v561_v3  ;;  %v3512_v2 = vadd.f32 %v867_v41, %v837_v44  ;;  %v3515_v57 = vmul.f32 %v1523_v54, %v1523_v54  ;;  %v776_v63 = vsel %vm744_vm11, %v735_v0, 0.0 }
 0x149   :  { %v1921_v13 = vpop.eup %1920  ;;  %vm1399_vm2 = vweird.f32 %v3477_v22  ;;  %v1547_v15 = vmul.f32 %v1522_v53, %v1522_v53  ;;  %v1524_v46 = vsub.f32 %v949_v33, %v3501_v28  ;;  %v570_v55 = vsel %vm3491_vm0, %v569_v58, %v565_v56 }
 0x14a   :  { %v1923_v17 = vpop.eup %1922  ;;  %vm1385_vm3 = vweird.f32 %v3482_v49  ;;  %v1389_v37 = vand.u32 2147483647, %v3482_v49  ;;  %v3524_v36 = vmul.f32 %v1124_v62, %v1099_v5  ;;  %v774_v32 = vsel %vm744_vm11, %v734_v26, 0.0 }
 0x14b   :  { %v1925_v24 = vpop.eup %1924  ;;  %v1395_v18 = vmul.f32 %v1923_v17, %v3477_v22  ;;  %vm3528_vm4 = vcmp.eq.f32.partialorder %v1403_v30, 8.507059e+37  ;;  %v1391_v29 = vand.u32 2147483648, %v3482_v49  ;;  %v263_v31 = vadd.f32 0.05, %v228_v25 }
 0x14c   :  { %v1406_v8 = vor.u32 1.1754944e-38, %v1405_v61  ;;  %v1381_v20 = vmul.f32 %v1925_v24, %v3482_v49  ;;  %v1670_v6 = vmul.f32 0.6931472, %v1921_v13  ;;  %1926 = vlog2.f32 %v1099_v5  ;;  %v112_v5 = vld [vmem:[%s4044_s2 + $0x98] sm:$0xff] }
 0x14d   :  { %v736_v9 = vmul.f32 %v3470_v38, %v570_v55  ;;  %v1396_v40 = vsub.f32 1.0, %v1395_v18  ;;  %v1672_v12 = vmul.f32 0.6931472, %v1919_v14  ;;  %1928 = vrcp.f32 %v3524_v36 }
 0x14e   :  { %v775_v21 = vadd.f32 %v774_v32, %v3365_v45  ;;  %v1382_v19 = vsub.f32 1.0, %v1381_v20  ;;  %vm3537_vm5 = vcmp.eq.f32.partialorder %v1389_v37, 8.507059e+37  ;;  %v3541_v47 = vmul.f32 %v1524_v46, %v1524_v46 }
 0x14f   :  { %v1397_v1 = vmul.f32 %v1923_v17, %v1396_v40  ;;  %vm1400_vm6 = vweird.f32 %v1923_v17  ;;  %v1392_v39 = vor.u32 1.1754944e-38, %v1391_v29  ;;  %v288_v60 = vmul.f32 2.0, %v263_v31  ;;  %v1068_v29 = vpop.xlane.xlu2 %1067 }
 0x150   :  { %v1383_v44 = vmul.f32 %v1925_v24, %v1382_v19  ;;  %vm1386_vm7 = vweird.f32 %v1925_v24  ;;  %v1702_v38 = vadd.f32 %v3437_v50, %v1670_v6  ;;  %v262_v16 = vadd.f32 0.05, %v225_v35  ;;  %vm1401_vm8 = vmor %vm1399_vm2, %vm1400_vm6  ;;  %v3555_v50 = vld [vmem:[%s4042_s0 + $0x98] sm:$0xff] }
 0x151   :  { %v778_v43 = vsel %vm744_vm11, %v736_v9, 0.0  ;;  %v1398_v51 = vadd.f32 %v1923_v17, %v1397_v1  ;;  %v3545_v45 = vmul.f32 %v288_v60, %v263_v31  ;;  %1930 = vlog2.f32 %v263_v31  ;;  %vm1387_vm9 = vmor %vm1385_vm3, %vm1386_vm7  ;;  %v113_v1 = vld [vmem:[%s4044_s2 + $0xa0] sm:$0xff] }
 0x152   :  { %v1927_v42 = vpop.eup %1926  ;;  %v777_v34 = vadd.f32 %v776_v63, %v775_v21  ;;  %v1384_v59 = vadd.f32 %v1925_v24, %v1383_v44  ;;  %v287_v52 = vmul.f32 2.0, %v262_v16  ;;  %1932 = vlog2.f32 %v262_v16  ;;  %v231_v63 = vpop.xlane.xlu1 %230 }
 0x153   :  { %v1929_v54 = vpop.eup %1928  ;;  %v1402_v0 = vsel %vm1401_vm8, %v1923_v17, %v1398_v51  ;;  %vm1413_vm10 = vweird.f32 %v3524_v36  ;;  %v1417_v22 = vand.u32 2147483647, %v3524_v36  ;;  %1934 = vrcp.f32 %v3545_v45 }
 0x154   :  { %v3563_v48 = vadd.f32 %v778_v43, %v777_v34  ;;  %v1407_v53 = vsel %vm3528_vm4, %v1406_v8, %v1402_v0  ;;  %v1388_v10 = vsel %vm1387_vm9, %v1925_v24, %v1384_v59  ;;  %v1409_v3 = vmul.f32 %v1929_v54, %v3524_v36 }
 0x155   :  { %v1393_v49 = vsel %vm3537_vm5, %v1392_v39, %v1388_v10  ;;  %v1419_v41 = vand.u32 2147483648, %v3524_v36  ;;  %v1674_v33 = vmul.f32 0.6931472, %v1927_v42  ;;  %v688_v26 = vsub.f32 %v112_v5, %v3555_v50  ;;  %v63_v39 = vld [vmem:[%s4042_s0 + $0xa0] sm:$0xff] }
 0x156   :  { %v1572_v27 = vmul.f32 %v1547_v15, %v1393_v49  ;;  %v1410_v58 = vsub.f32 1.0, %v1409_v3  ;;  %v1703_v30 = vadd.f32 %v1702_v38, %v1672_v12  ;;  %v3575_v62 = vmul.f32 %v287_v52, %v262_v16  ;;  %v951_v42 = vld [vmem:[%s4049_s7 + $0xa0] sm:$0xff]  ;;  %v1065_v3 = vpop.xlane.xlu0 %1064 }
 0x157   :  { %v1931_v14 = vpop.eup %1930  ;;  %v1573_v56 = vmul.f32 %v3515_v57, %v1407_v53  ;;  %vm3578_vm12 = vcmp.eq.f32.partialorder %v1417_v22, 8.507059e+37  ;;  %v596_v25 = vand.u32 2147483648, %v3545_v45  ;;  %v687_v13 = vsub.f32 %v111_v7, %v3501_v28 }
 0x158   :  { %v1933_v46 = vpop.eup %1932  ;;  %v1411_v17 = vmul.f32 %v1929_v54, %v1410_v58  ;;  %vm1414_vm13 = vweird.f32 %v1929_v54  ;;  %v594_v15 = vand.u32 2147483647, %v3545_v45  ;;  %1936 = vrcp.f32 %v3575_v62 }
 0x159   :  { %v1935_v55 = vpop.eup %1934  ;;  %v1420_v37 = vor.u32 1.1754944e-38, %v1419_v41  ;;  %v3586_v24 = vadd.f32 %v1703_v30, %v1674_v33  ;;  %vm590_vm14 = vweird.f32 %v3545_v45  ;;  %v3589_v57 = vmul.f32 %v688_v26, %v688_v26  ;;  %vm1415_vm15 = vmor %vm1413_vm10, %vm1414_vm13 }
 0x15a   :  { %v1612_v32 = vsel %vm744_vm11, %v1572_v27, 0.0  ;;  %v1412_v18 = vadd.f32 %v1929_v54, %v1411_v17  ;;  %v586_v28 = vmul.f32 %v1935_v55, %v3545_v45  ;;  %v264_v11 = vadd.f32 0.05, %v231_v63  ;;  %v1071_v33 = vpop.xlane.xlu1 %1070 }
 0x15b   :  { %v1614_v31 = vsel %vm744_vm11, %v1573_v56, 0.0  ;;  %v597_v8 = vor.u32 1.1754944e-38, %v596_v25  ;;  %v841_v20 = vmul.f32 0.6931472, %v1931_v14  ;;  %v3596_v6 = vmul.f32 %v687_v13, %v687_v13 }
 0x15c   :  { %v1416_v9 = vsel %vm1415_vm15, %v1929_v54, %v1412_v18  ;;  %v587_v40 = vsub.f32 1.0, %v586_v28  ;;  %vm3598_vm0 = vcmp.eq.f32.partialorder %v594_v15, 8.507059e+37  ;;  %v839_v35 = vmul.f32 0.6931472, %v1933_v46 }
 0x15d   :  { %v289_v21 = vmul.f32 2.0, %v264_v11  ;;  %v1613_v19 = vadd.f32 %v1612_v32, %v3467_v4  ;;  %v1421_v23 = vsel %vm3578_vm12, %v1420_v37, %v1416_v9  ;;  %v580_v36 = vand.u32 2147483647, %v3575_v62 }
 0x15e   :  { %v1101_v60 = vadd.f32 0.05, %v1068_v29  ;;  %v1937_v44 = vpop.eup %1936  ;;  %v588_v38 = vmul.f32 %v1935_v55, %v587_v40  ;;  %vm591_vm1 = vweird.f32 %v1935_v55  ;;  %v582_v16 = vand.u32 2147483648, %v3575_v62 }
 0x15f   :  { %v3613_v4 = vmul.f32 %v289_v21, %v264_v11  ;;  %v1574_v43 = vmul.f32 %v3541_v47, %v1421_v23  ;;  %v572_v51 = vmul.f32 %v1937_v44, %v3575_v62  ;;  %1938 = vlog2.f32 %v264_v11  ;;  %vm3624_vm2 = vmor %vm590_vm14, %vm591_vm1  ;;  %v237_v21 = vpop.xlane.xlu2 %236 }
 0x160   :  { %v1126_v34 = vmul.f32 2.0, %v1101_v60  ;;  %v589_v59 = vadd.f32 %v1935_v55, %v588_v38  ;;  %v869_v5 = vadd.f32 %v3512_v2, %v839_v35  ;;  %v689_v52 = vsub.f32 %v113_v1, %v63_v39  ;;  %v3684_v38 = vld [vmem:[%s4042_s0 + $0xa8] sm:$0xff] }
 0x161   :  { %1940 = vrcp.f32 %v3613_v4  ;;  %v1615_v54 = vadd.f32 %v1614_v31, %v1613_v19  ;;  %v573_v47 = vsub.f32 1.0, %v572_v51  ;;  %vm576_vm3 = vweird.f32 %v3575_v62  ;;  %v950_v31 = vld [vmem:[%s4049_s7 + $0x98] sm:$0xff] }
 0x162   :  { %vm3629_vm4 = vcmp.eq.f32.partialorder %v580_v36, 8.507059e+37  ;;  %v593_v2 = vsel %vm3624_vm2, %v1935_v55, %v589_v59  ;;  %vm577_vm5 = vweird.f32 %v1937_v44  ;;  %v3635_v53 = vmul.f32 %v1126_v34, %v1101_v60 }
 0x163   :  { %v1526_v10 = vsub.f32 %v951_v42, %v63_v39  ;;  %v1616_v45 = vsel %vm744_vm11, %v1574_v43, 0.0  ;;  %v574_v7 = vmul.f32 %v1937_v44, %v573_v47  ;;  %v608_v49 = vand.u32 2147483647, %v3613_v4  ;;  %vm578_vm7 = vmor %vm576_vm3, %vm577_vm5 }
 0x164   :  { %v610_v41 = vand.u32 2147483648, %v3613_v4  ;;  %v583_v26 = vor.u32 1.1754944e-38, %v582_v16  ;;  %v714_v27 = vmul.f32 %v689_v52, %v689_v52  ;;  %v870_v58 = vadd.f32 %v869_v5, %v841_v20 }
 0x165   :  { %1942 = vrcp.f32 %v3635_v53  ;;  %v1939_v30 = vpop.eup %1938  ;;  %v598_v14 = vsel %vm3598_vm0, %v597_v8, %v593_v2  ;;  %v575_v56 = vadd.f32 %v1937_v44, %v574_v7  ;;  %vm604_vm6 = vweird.f32 %v3613_v4 }
 0x166   :  { %v1100_v61 = vadd.f32 0.05, %v1065_v3  ;;  %v3644_v13 = vadd.f32 %v1616_v45, %v1615_v54  ;;  %v3649_v63 = vmul.f32 %v1526_v10, %v1526_v10  ;;  %1944 = vlog2.f32 %v1101_v60 }
 0x167   :  { %v1941_v25 = vpop.eup %1940  ;;  %v1102_v46 = vadd.f32 0.05, %v1071_v33  ;;  %v579_v17 = vsel %vm578_vm7, %v1937_v44, %v575_v56  ;;  %vm3652_vm8 = vcmp.eq.f32.partialorder %v608_v49, 8.507059e+37  ;;  %v611_v37 = vor.u32 1.1754944e-38, %v610_v41  ;;  %v952_v44 = vld [vmem:[%s4049_s7 + $0xa8] sm:$0xff]  ;;  %v115_v56 = vld [vmem:[%s4044_s2 + $0xb0] sm:$0xff] }
 0x168   :  { %v600_v15 = vmul.f32 %v1941_v25, %v3613_v4  ;;  %v738_v32 = vmul.f32 %v3589_v57, %v598_v14  ;;  %v584_v18 = vsel %vm3629_vm4, %v583_v26, %v579_v17  ;;  %v843_v28 = vmul.f32 0.6931472, %v1939_v30 }
 0x169   :  { %v1125_v62 = vmul.f32 2.0, %v1100_v61  ;;  %v737_v11 = vmul.f32 %v3596_v6, %v584_v18  ;;  %vm1441_vm9 = vweird.f32 %v3635_v53  ;;  %1946 = vlog2.f32 %v1100_v61 }
 0x16a   :  { %v601_v29 = vsub.f32 1.0, %v600_v15  ;;  %v1445_v20 = vand.u32 2147483647, %v3635_v53  ;;  %v1447_v57 = vand.u32 2147483648, %v3635_v53  ;;  %v1127_v40 = vmul.f32 2.0, %v1102_v46 }
 0x16b   :  { %v3664_v8 = vpop.eup %1942  ;;  %v3668_v9 = vmul.f32 %v1125_v62, %v1100_v61  ;;  %v780_v12 = vsel %vm744_vm11, %v737_v11, 0.0  ;;  %vm605_vm10 = vweird.f32 %v1941_v25  ;;  %v782_v23 = vsel %vm744_vm11, %v738_v32, 0.0  ;;  %v3733_v61 = vld [vmem:[%s4042_s0 + $0xb0] sm:$0xff]  ;;  %v240_v11 = vpop.xlane.xlu1 %239 }
 0x16c   :  { %v602_v6 = vmul.f32 %v1941_v25, %v601_v29  ;;  %v1437_v35 = vmul.f32 %v3664_v8, %v3635_v53  ;;  %v1945_v19 = vpop.eup %1944  ;;  %v3674_v36 = vadd.f32 %v870_v58, %v843_v28  ;;  %v1525_v1 = vsub.f32 %v950_v31, %v3555_v50  ;;  %vm606_vm12 = vmor %vm604_vm6, %vm605_vm10  ;;  %v116_v50 = vld [vmem:[%s4044_s2 + $0xb8] sm:$0xff] }
 0x16d   :  { %1948 = vrcp.f32 %v3668_v9  ;;  %v3686_v16 = vmul.f32 %v1127_v40, %v1102_v46  ;;  %v781_v43 = vadd.f32 %v780_v12, %v3563_v48  ;;  %vm1442_vm13 = vweird.f32 %v3664_v8 }
 0x16e   :  { %v603_v39 = vadd.f32 %v1941_v25, %v602_v6  ;;  %v1438_v60 = vsub.f32 1.0, %v1437_v35  ;;  %1950 = vlog2.f32 %v1102_v46  ;;  %vm3693_vm14 = vcmp.eq.f32.partialorder %v1445_v20, 8.507059e+37  ;;  %vm3709_vm15 = vmor %vm1441_vm9, %vm1442_vm13 }
 0x16f   :  { %v266_v51 = vadd.f32 0.05, %v237_v21  ;;  %v1947_v42 = vpop.eup %1946  ;;  %v1431_v5 = vand.u32 2147483647, %v3668_v9  ;;  %1952 = vrcp.f32 %v3686_v16  ;;  %v1448_v4 = vor.u32 1.1754944e-38, %v1447_v57 }
 0x170   :  { %v607_v34 = vsel %vm606_vm12, %v1941_v25, %v603_v39  ;;  %v1439_v59 = vmul.f32 %v3664_v8, %v1438_v60  ;;  %v1433_v52 = vand.u32 2147483648, %v3668_v9  ;;  %v1527_v54 = vsub.f32 %v952_v44, %v3684_v38  ;;  %v114_v39 = vld [vmem:[%s4044_s2 + $0xa8] sm:$0xff] }
 0x171   :  { %v612_v48 = vsel %vm3652_vm8, %v611_v37, %v607_v34  ;;  %v1550_v22 = vmul.f32 %v1525_v1, %v1525_v1  ;;  %v1676_v2 = vmul.f32 0.6931472, %v1947_v42  ;;  %v1678_v45 = vmul.f32 0.6931472, %v1945_v19  ;;  %v234_v37 = vpop.xlane.xlu0 %233 }
 0x172   :  { %v739_v0 = vmul.f32 %v714_v27, %v612_v48  ;;  %v1440_v47 = vadd.f32 %v3664_v8, %v1439_v59  ;;  %vm1427_vm0 = vweird.f32 %v3668_v9  ;;  %v1459_v7 = vand.u32 2147483647, %v3686_v16 }
 0x173   :  { %v1949_v10 = vpop.eup %1948  ;;  %v291_v49 = vmul.f32 2.0, %v266_v51  ;;  %v783_v33 = vadd.f32 %v782_v23, %v781_v43  ;;  %vm3719_vm1 = vcmp.eq.f32.partialorder %v1431_v5, 8.507059e+37  ;;  %v1434_v58 = vor.u32 1.1754944e-38, %v1433_v52 }
 0x174   :  { %v1951_v41 = vpop.eup %1950  ;;  %v1444_v26 = vsel %vm3709_vm15, %v3664_v8, %v1440_v47  ;;  %v1423_v27 = vmul.f32 %v1949_v10, %v3668_v9  ;;  %vm1455_vm2 = vweird.f32 %v3686_v16  ;;  %v1461_v30 = vand.u32 2147483648, %v3686_v16 }
 0x175   :  { %v3725_v14 = vmul.f32 %v1527_v54, %v1527_v54  ;;  %v1953_v25 = vpop.eup %1952  ;;  %v784_v46 = vsel %vm744_vm11, %v739_v0, 0.0  ;;  %v1705_v15 = vadd.f32 %v3586_v24, %v1676_v2  ;;  %v3737_v55 = vmul.f32 %v291_v49, %v266_v51 }
 0x176   :  { %v1424_v17 = vsub.f32 1.0, %v1423_v27  ;;  %v1449_v32 = vsel %vm3693_vm14, %v1448_v4, %v1444_v26  ;;  %v1451_v18 = vmul.f32 %v1953_v25, %v3686_v16  ;;  %vm3742_vm3 = vcmp.eq.f32.partialorder %v1459_v7, 8.507059e+37 }
 0x177   :  { %v1680_v62 = vmul.f32 0.6931472, %v1951_v41  ;;  %vm1428_vm4 = vweird.f32 %v1949_v10  ;;  %1954 = vrcp.f32 %v3737_v55  ;;  %v691_v24 = vsub.f32 %v115_v56, %v3733_v61 }
 0x178   :  { %v1425_v29 = vmul.f32 %v1949_v10, %v1424_v17  ;;  %v3748_v31 = vadd.f32 %v784_v46, %v783_v33  ;;  %v1452_v8 = vsub.f32 1.0, %v1451_v18  ;;  %v1462_v20 = vor.u32 1.1754944e-38, %v1461_v30  ;;  %vm1429_vm5 = vmor %vm1427_vm0, %vm1428_vm4 }
 0x179   :  { %v265_v57 = vadd.f32 0.05, %v234_v37  ;;  %v1576_v40 = vmul.f32 %v3649_v63, %v1449_v32  ;;  %v1706_v6 = vadd.f32 %v1705_v15, %v1678_v45  ;;  %v267_v35 = vadd.f32 0.05, %v240_v11  ;;  %v1077_v45 = vpop.xlane.xlu2 %1076  ;;  %v1074_v56 = vpop.xlane.xlu0 %1073 }
 0x17a   :  { %v1426_v12 = vadd.f32 %v1949_v10, %v1425_v29  ;;  %v1453_v21 = vmul.f32 %v1953_v25, %v1452_v8  ;;  %vm1456_vm6 = vweird.f32 %v1953_v25  ;;  %1956 = vlog2.f32 %v266_v51  ;;  %v66_v51 = vld [vmem:[%s4042_s0 + $0xb8] sm:$0xff] }
 0x17b   :  { %v290_v19 = vmul.f32 2.0, %v265_v57  ;;  %v3753_v1 = vmul.f32 %v691_v24, %v691_v24  ;;  %1958 = vlog2.f32 %v265_v57  ;;  %v292_v60 = vmul.f32 2.0, %v267_v35  ;;  %vm1457_vm7 = vmor %vm1455_vm2, %vm1456_vm6 }
 0x17c   :  { %v1430_v23 = vsel %vm1429_vm5, %v1949_v10, %v1426_v12  ;;  %v1454_v44 = vadd.f32 %v1953_v25, %v1453_v21  ;;  %v3760_v43 = vadd.f32 %v1706_v6, %v1680_v62  ;;  %v636_v59 = vand.u32 2147483647, %v3737_v55 }
 0x17d   :  { %v1435_v63 = vsel %vm3719_vm1, %v1434_v58, %v1430_v23  ;;  %v3762_v9 = vmul.f32 %v290_v19, %v265_v57  ;;  %v1955_v42 = vpop.eup %1954  ;;  %v638_v5 = vand.u32 2147483648, %v3737_v55  ;;  %v3775_v48 = vmul.f32 %v292_v60, %v267_v35 }
 0x17e   :  { %v1575_v34 = vmul.f32 %v1550_v22, %v1435_v63  ;;  %v1458_v4 = vsel %vm1457_vm7, %v1953_v25, %v1454_v44  ;;  %v628_v52 = vmul.f32 %v1955_v42, %v3737_v55  ;;  %v690_v54 = vsub.f32 %v114_v39, %v3684_v38  ;;  %v953_v63 = vld [vmem:[%s4049_s7 + $0xb0] sm:$0xff] }
 0x17f   :  { %1960 = vrcp.f32 %v3762_v9  ;;  %v1463_v47 = vsel %vm3742_vm3, %v1462_v20, %v1458_v4  ;;  %v692_v16 = vsub.f32 %v116_v50, %v66_v51  ;;  %v1620_v2 = vsel %vm744_vm11, %v1576_v40, 0.0 }
 0x180   :  { %v1618_v0 = vsel %vm744_vm11, %v1575_v34, 0.0  ;;  %1962 = vlog2.f32 %v267_v35  ;;  %v1957_v22 = vpop.eup %1956  ;;  %v629_v10 = vsub.f32 1.0, %v628_v52  ;;  %vm632_vm8 = vweird.f32 %v3737_v55 }
 0x181   :  { %v622_v3 = vand.u32 2147483647, %v3762_v9  ;;  %v1959_v7 = vpop.eup %1958  ;;  %v1619_v49 = vadd.f32 %v1618_v0, %v3644_v13  ;;  %v1577_v38 = vmul.f32 %v3725_v14, %v1463_v47  ;;  %v624_v41 = vand.u32 2147483648, %v3762_v9  ;;  %v954_v13 = vld [vmem:[%s4049_s7 + $0xb8] sm:$0xff] }
 0x182   :  { %1964 = vrcp.f32 %v3775_v48  ;;  %v630_v33 = vmul.f32 %v1955_v42, %v629_v10  ;;  %vm633_vm9 = vweird.f32 %v1955_v42  ;;  %vm3790_vm10 = vcmp.eq.f32.partialorder %v636_v59, 8.507059e+37 }
 0x183   :  { %v639_v27 = vor.u32 1.1754944e-38, %v638_v5  ;;  %v715_v53 = vmul.f32 %v690_v54, %v690_v54  ;;  %v845_v58 = vmul.f32 0.6931472, %v1959_v7  ;;  %v3794_v30 = vmul.f32 %v692_v16, %v692_v16  ;;  %vm634_vm13 = vmor %vm632_vm8, %vm633_vm9  ;;  %v1080_v16 = vpop.xlane.xlu1 %1079  ;;  %v955_v7 = vld [vmem:[%s4049_s7 + $0xc0] sm:$0xff] }
 0x184   :  { %v1104_v14 = vadd.f32 0.05, %v1077_v45  ;;  %v631_v46 = vadd.f32 %v1955_v42, %v630_v33  ;;  %v847_v17 = vmul.f32 0.6931472, %v1957_v22  ;;  %vm618_vm12 = vweird.f32 %v3762_v9  ;;  %v243_v22 = vpop.xlane.xlu0 %242 }
 0x185   :  { %v1961_v25 = vpop.eup %1960  ;;  %v650_v15 = vand.u32 2147483647, %v3775_v48  ;;  %v1621_v32 = vadd.f32 %v1620_v2, %v1619_v49  ;;  %v1622_v18 = vsel %vm744_vm11, %v1577_v38, 0.0  ;;  %vm3806_vm14 = vcmp.eq.f32.partialorder %v622_v3, 8.507059e+37  ;;  %v67_v49 = vld [vmem:[%s4042_s0 + $0xc0] sm:$0xff] }
 0x186   :  { %v1963_v37 = vpop.eup %1962  ;;  %v614_v28 = vmul.f32 %v1961_v25, %v3762_v9  ;;  %v625_v11 = vor.u32 1.1754944e-38, %v624_v41  ;;  %v635_v29 = vsel %vm634_vm13, %v1955_v42, %v631_v46  ;;  %vm646_vm15 = vweird.f32 %v3775_v48 }
 0x187   :  { %v652_v24 = vand.u32 2147483648, %v3775_v48  ;;  %v1129_v8 = vmul.f32 2.0, %v1104_v14  ;;  %v1529_v20 = vsub.f32 %v954_v13, %v66_v51  ;;  %v640_v40 = vsel %vm3790_vm10, %v639_v27, %v635_v29 }
 0x188   :  { %v1965_v57 = vpop.eup %1964  ;;  %v615_v55 = vsub.f32 1.0, %v614_v28  ;;  %v872_v12 = vadd.f32 %v3674_v36, %v845_v58  ;;  %v1103_v6 = vadd.f32 0.05, %v1074_v56  ;;  %vm619_vm0 = vweird.f32 %v1961_v25 }
 0x189   :  { %v642_v35 = vmul.f32 %v1965_v57, %v3775_v48  ;;  %vm3816_vm1 = vcmp.eq.f32.partialorder %v650_v15, 8.507059e+37  ;;  %v849_v19 = vmul.f32 0.6931472, %v1963_v37  ;;  %v3820_v23 = vmul.f32 %v1129_v8, %v1104_v14  ;;  %vm620_vm2 = vmor %vm618_vm12, %vm619_vm0 }
 0x18a   :  { %v741_v39 = vmul.f32 %v3753_v1, %v640_v40  ;;  %v616_v60 = vmul.f32 %v1961_v25, %v615_v55  ;;  %1966 = vlog2.f32 %v1104_v14  ;;  %v1128_v36 = vmul.f32 2.0, %v1103_v6 }
 0x18b   :  { %v3826_v44 = vadd.f32 %v1622_v18, %v1621_v32  ;;  %v643_v50 = vsub.f32 1.0, %v642_v35  ;;  %v653_v51 = vor.u32 1.1754944e-38, %v652_v24  ;;  %1968 = vrcp.f32 %v3820_v23 }
 0x18c   :  { %v617_v42 = vadd.f32 %v1961_v25, %v616_v60  ;;  %v873_v34 = vadd.f32 %v872_v12, %v847_v17  ;;  %v3829_v59 = vmul.f32 %v1529_v20, %v1529_v20  ;;  %v3831_v5 = vmul.f32 %v1128_v36, %v1103_v6  ;;  %v3895_v36 = vld [vmem:[%s4046_s4] sm:$0xff] }
 0x18d   :  { %v644_v1 = vmul.f32 %v1965_v57, %v643_v50  ;;  %vm647_vm3 = vweird.f32 %v1965_v57  ;;  %v1528_v4 = vsub.f32 %v953_v63, %v3733_v61  ;;  %1970 = vlog2.f32 %v1103_v6  ;;  %v892_v20 = vld [vmem:[%s4048_s6] sm:$0xff] }
 0x18e   :  { %v788_v52 = vsel %vm744_vm11, %v741_v39, 0.0  ;;  %v621_v54 = vsel %vm620_vm2, %v1961_v25, %v617_v42  ;;  %v3838_v0 = vadd.f32 %v873_v34, %v849_v19  ;;  %v1487_v47 = vand.u32 2147483647, %v3820_v23  ;;  %vm648_vm4 = vmor %vm646_vm15, %vm647_vm3 }
 0x18f   :  { %v626_v2 = vsel %vm3806_vm14, %v625_v11, %v621_v54  ;;  %v645_v10 = vadd.f32 %v1965_v57, %v644_v1  ;;  %v1489_v9 = vand.u32 2147483648, %v3820_v23  ;;  %1972 = vrcp.f32 %v3831_v5 }
 0x190   :  { %v1967_v3 = vpop.eup %1966  ;;  %v740_v61 = vmul.f32 %v715_v53, %v626_v2  ;;  %vm1483_vm5 = vweird.f32 %v3820_v23  ;;  %v1473_v45 = vand.u32 2147483647, %v3831_v5  ;;  %v3856_v33 = vmul.f32 %v1528_v4, %v1528_v4  ;;  %v3908_v4 = vld [vmem:[%s4046_s4 + $0x8] sm:$0xff] }
 0x191   :  { %v1969_v38 = vpop.eup %1968  ;;  %v649_v41 = vsel %vm648_vm4, %v1965_v57, %v645_v10  ;;  %v2008_v26 = vmov 0.0   ;;  %v1105_v48 = vadd.f32 0.05, %v1080_v16  ;;  %v268_v27 = vadd.f32 0.05, %v243_v22  ;;  %v3915_v22 = vld [vmem:[%s4046_s4 + $0x10] sm:$0xff] }
 0x192   :  { %42 = vst [vmem:[#allocation2] sm:$0xff] %v2008_v26  ;;  %v786_v53 = vsel %vm744_vm11, %v740_v61, 0.0  ;;  %v654_v58 = vsel %vm3816_vm1, %v653_v51, %v649_v41  ;;  %v1479_v13 = vmul.f32 %v1969_v38, %v3820_v23  ;;  %v1475_v14 = vand.u32 2147483648, %v3831_v5  ;;  %v888_v23 = vld [vmem:[%s4047_s5] sm:$0xff]  ;;  %v889_v2 = vld [vmem:[%s4047_s5 + $0x8] sm:$0xff]  ;;  %v890_v10 = vld [vmem:[%s4047_s5 + $0x10] sm:$0xff] }
 0x193   :  { %v1971_v56 = vpop.eup %1970  ;;  %vm3863_vm6 = vcmp.eq.f32.partialorder %v1487_v47, 8.507059e+37  ;;  %v1490_v46 = vor.u32 1.1754944e-38, %v1489_v9  ;;  %v1684_v17 = vmul.f32 0.6931472, %v1967_v3  ;;  %v1530_v15 = vsub.f32 %v955_v7, %v67_v49  ;;  %v891_v26 = vld [vmem:[%s4047_s5 + $0x18] sm:$0x1] }
 0x194   :  { %v742_v37 = vmul.f32 %v3794_v30, %v654_v58  ;;  %v1480_v32 = vsub.f32 1.0, %v1479_v13  ;;  %vm1469_vm7 = vweird.f32 %v3831_v5  ;;  %v1682_v18 = vmul.f32 0.6931472, %v1971_v56  ;;  %v117_v30 = vld [vmem:[%s4044_s2 + $0xc0] sm:$0xff] }
 0x195   :  { %v1130_v28 = vmul.f32 2.0, %v1105_v48  ;;  %v1973_v62 = vpop.eup %1972  ;;  %v787_v11 = vadd.f32 %v786_v53, %v3748_v31  ;;  %vm1484_vm8 = vweird.f32 %v1969_v38  ;;  %1974 = vlog2.f32 %v1105_v48 }
 0x196   :  { %v293_v29 = vmul.f32 2.0, %v268_v27  ;;  %v1481_v24 = vmul.f32 %v1969_v38, %v1480_v32  ;;  %v1465_v8 = vmul.f32 %v1973_v62, %v3831_v5  ;;  %vm3871_vm9 = vcmp.eq.f32.partialorder %v1473_v45, 8.507059e+37  ;;  %vm1485_vm10 = vmor %vm1483_vm5, %vm1484_vm8  ;;  %v3939_v5 = vld [vmem:[%s4046_s4 + $0x18] sm:$0x1] }
 0x197   :  { %v1476_v57 = vor.u32 1.1754944e-38, %v1475_v14  ;;  %v1708_v40 = vadd.f32 %v3760_v43, %v1682_v18  ;;  %v3879_v55 = vmul.f32 %v1130_v28, %v1105_v48  ;;  %v3881_v31 = vmul.f32 %v1530_v15, %v1530_v15 }
 0x198   :  { %v3883_v12 = vmul.f32 %v293_v29, %v268_v27  ;;  %v790_v6 = vsel %vm744_vm11, %v742_v37, 0.0  ;;  %v1482_v35 = vadd.f32 %v1969_v38, %v1481_v24  ;;  %v1466_v21 = vsub.f32 1.0, %v1465_v8 }
 0x199   :  { %1976 = vlog2.f32 %v268_v27  ;;  %v789_v19 = vadd.f32 %v788_v52, %v787_v11  ;;  %v1503_v43 = vand.u32 2147483648, %v3879_v55  ;;  %v693_v39 = vsub.f32 %v117_v30, %v67_v49 }
 0x19a   :  { %1978 = vrcp.f32 %v3879_v55  ;;  %v1486_v60 = vsel %vm1485_vm10, %v1969_v38, %v1482_v35  ;;  %v1467_v63 = vmul.f32 %v1973_v62, %v1466_v21  ;;  %vm1470_vm12 = vweird.f32 %v1973_v62 }
 0x19b   :  { %1980 = vrcp.f32 %v3883_v12  ;;  %v1975_v50 = vpop.eup %1974  ;;  %v3900_v51 = vadd.f32 %v790_v6, %v789_v19  ;;  %v1491_v42 = vsel %vm3863_vm6, %v1490_v46, %v1486_v60  ;;  %v1501_v34 = vand.u32 2147483647, %v3879_v55  ;;  %vm1471_vm13 = vmor %vm1469_vm7, %vm1470_vm12 }
 0x19c   :  { %v1709_v1 = vadd.f32 %v1708_v40, %v1684_v17  ;;  %v1579_v52 = vmul.f32 %v3829_v59, %v1491_v42  ;;  %v1468_v54 = vadd.f32 %v1973_v62, %v1467_v63  ;;  %v1686_v47 = vmul.f32 0.6931472, %v1975_v50 }
 0x19d   :  { %v666_v16 = vand.u32 2147483648, %v3883_v12  ;;  %v3926_v59 = vor.u32 1.1754944e-38, %v1503_v43  ;;  %v664_v9 = vand.u32 2147483647, %v3883_v12  ;;  %v3929_v3 = vmul.f32 %v693_v39, %v693_v39  ;;  %v893_v43 = vld [vmem:[%s4048_s6 + $0x8] sm:$0xff] }
 0x19e   :  { %v896_v61 = vsub.f32 %v888_v23, %v3895_v36  ;;  %v1626_v7 = vsel %vm744_vm11, %v1579_v52, 0.0  ;;  %v1472_v49 = vsel %vm1471_vm13, %v1973_v62, %v1468_v54  ;;  %vm1497_vm14 = vweird.f32 %v3879_v55 }
 0x19f   :  { %v1977_v45 = vpop.eup %1976  ;;  %v1710_v38 = vadd.f32 %v1709_v1, %v1686_v47  ;;  %v3934_v41 = vor.u32 1.1754944e-38, %v666_v16  ;;  %v1477_v27 = vsel %vm3871_vm9, %v1476_v57, %v1472_v49  ;;  %vm660_vm15 = vweird.f32 %v3883_v12  ;;  %v1718_v16 = vld [vmem:[%s4051_s9] sm:$0xff] }
 0x1a0   :  { %v1979_v48 = vpop.eup %1978  ;;  %v851_v53 = vmul.f32 0.6931472, %v1977_v45  ;;  %v897_v58 = vsub.f32 %v889_v2, %v3908_v4  ;;  %v898_v13 = vsub.f32 %v890_v10, %v3915_v22  ;;  %v1578_v56 = vmul.f32 %v3856_v33, %v1477_v27 }
 0x1a1   :  { %v1981_v14 = vpop.eup %1980  ;;  %v1493_v25 = vmul.f32 %v1979_v48, %v3879_v55  ;;  %vm1498_vm0 = vweird.f32 %v1979_v48  ;;  %vm3951_vm1 = vcmp.eq.f32.partialorder %v1501_v34, 8.507059e+37  ;;  %v1711_v17 = vrot.slane %v1710_v38, 4  ;;  %v895_v34 = vld [vmem:[%s4048_s6 + $0x18] sm:$0x1] }
 0x1a2   :  { %vm882_vm2 = vcmask 0   ;;  %v656_v15 = vmul.f32 %v1981_v14, %v3883_v12  ;;  %vm661_vm3 = vweird.f32 %v1981_v14  ;;  %vm3956_vm4 = vcmp.eq.f32.partialorder %v664_v9, 8.507059e+37  ;;  %vm1499_vm6 = vmor %vm1497_vm14, %vm1498_vm0  ;;  %v1719_v12 = vld [vmem:[%s4051_s9 + $0x8] sm:$0xff] }
 0x1a3   :  { %v875_v32 = vadd.f32 %v3838_v0, %v851_v53  ;;  %v899_v33 = vsub.f32 %v891_v26, %v3939_v5  ;;  %v1624_v18 = vsel %vm744_vm11, %v1578_v56, 0.0  ;;  %v1494_v28 = vsub.f32 1.0, %v1493_v25  ;;  %vm662_vm7 = vmor %vm660_vm15, %vm661_vm3 }
 0x1a4   :  { %v1712_v62 = vadd.f32 %v1711_v17, %v1710_v38  ;;  %v900_v11 = vmul.f32 %v896_v61, %v896_v61  ;;  %v1625_v29 = vadd.f32 %v1624_v18, %v3826_v44  ;;  %v657_v24 = vsub.f32 1.0, %v656_v15  ;;  %v894_v44 = vld [vmem:[%s4048_s6 + $0x10] sm:$0xff]  ;;  %v1721_v38 = vld [vmem:[%s4051_s9 + $0x18] sm:$0x1] }
 0x1a5   :  { %v876_v8 = vrot.slane %v875_v32, 4  ;;  %v901_v57 = vmul.f32 %v897_v58, %v897_v58  ;;  %v1495_v30 = vmul.f32 %v1979_v48, %v1494_v28  ;;  %v902_v6 = vmul.f32 %v898_v13, %v898_v13  ;;  %v1724_v58 = vld [vmem:[%s4052_s10 + $0x10] sm:$0xff] }
 0x1a6   :  { %v1713_v40 = vrot.slane %v1712_v62, 2  ;;  %v903_v0 = vmul.f32 %v899_v33, %v899_v33  ;;  %v1627_v35 = vadd.f32 %v1626_v7, %v1625_v29  ;;  %v658_v21 = vmul.f32 %v1981_v14, %v657_v24 }
 0x1a7   :  { %v877_v19 = vadd.f32 %v876_v8, %v875_v32  ;;  %v904_v39 = vadd.f32 %v901_v57, %v900_v11  ;;  %v1496_v60 = vadd.f32 %v1979_v48, %v1495_v30  ;;  %vm906_vm5 = vcmask 1040384   ;;  %v1726_v32 = vld [vmem:[%s4053_s11] sm:$0xff]  ;;  %v1727_v11 = vld [vmem:[%s4053_s11 + $0x8] sm:$0xff] }
 0x1a8   :  { %v1714_v63 = vadd.f32 %v1713_v40, %v1712_v62  ;;  %v916_v23 = vmul.f32 %v892_v20, %v3895_v36  ;;  %v659_v50 = vadd.f32 %v1981_v14, %v658_v21  ;;  %v907_v52 = vsel %vm906_vm5, %v903_v0, 0.0  ;;  %v1729_v0 = vld [vmem:[%s4053_s11 + $0x18] sm:$0x1] }
 0x1a9   :  { %v878_v42 = vrot.slane %v877_v19, 2  ;;  %v905_v1 = vadd.f32 %v904_v39, %v902_v6  ;;  %v1500_v54 = vsel %vm1499_vm6, %v1979_v48, %v1496_v60  ;;  %v917_v36 = vmul.f32 %v893_v43, %v3908_v4  ;;  %v1722_v4 = vld [vmem:[%s4052_s10] sm:$0xff] }
 0x1aa   :  { %v1715_v47 = vrot.slane %v1714_v63, 1  ;;  %v918_v55 = vmul.f32 %v894_v44, %v3915_v22  ;;  %v1505_v2 = vsel %vm3951_vm1, %v3926_v59, %v1500_v54  ;;  %v663_v10 = vsel %vm662_vm7, %v1981_v14, %v659_v50  ;;  %v1723_v22 = vld [vmem:[%s4052_s10 + $0x8] sm:$0xff] }
 0x1ab   :  { %v879_v9 = vadd.f32 %v878_v42, %v877_v19  ;;  %v908_v61 = vadd.f32 %v907_v52, %v905_v1  ;;  %v1580_v45 = vmul.f32 %v3881_v31, %v1505_v2  ;;  %v668_v59 = vsel %vm3956_vm4, %v3934_v41, %v663_v10  ;;  %v1720_v31 = vld [vmem:[%s4051_s9 + $0x10] sm:$0xff]  ;;  %v1725_v41 = vld [vmem:[%s4052_s10 + $0x18] sm:$0x1] }
 0x1ac   :  { %v1716_v7 = vadd.f32 %v1715_v47, %v1714_v63  ;;  %v919_v49 = vmul.f32 %v895_v34, %v3939_v5  ;;  %v743_v26 = vmul.f32 %v3929_v3, %v668_v59  ;;  %v920_v53 = vadd.f32 %v917_v36, %v916_v23 }
 0x1ad   :  { %v880_v48 = vrot.slane %v879_v9, 1  ;;  %v909_v27 = vrot.slane %v908_v61, 4  ;;  %v1628_v5 = vsel %vm744_vm11, %v1580_v45, 0.0  ;;  %v1730_v13 = vsub.f32 %v1722_v4, %v1718_v16 }
 0x1ae   :  { %1717 = vst.msk [vmem:[#allocation2 + $0x5] sm:$0x1] %vm882_vm2, %v1716_v7  ;;  %v922_v3 = vsel %vm906_vm5, %v919_v49, 0.0  ;;  %v1731_v14 = vsub.f32 %v1723_v22, %v1719_v12  ;;  %v1629_v56 = vadd.f32 %v1628_v5, %v1627_v35  ;;  %v792_v25 = vsel %vm744_vm11, %v743_v26, 0.0 }
 0x1af   :  { %v881_v46 = vadd.f32 %v880_v48, %v879_v9  ;;  %v910_v17 = vadd.f32 %v909_v27, %v908_v61  ;;  %v793_v15 = vadd.f32 %v792_v25, %v3900_v51  ;;  %v921_v37 = vadd.f32 %v920_v53, %v918_v55  ;;  %v1728_v51 = vld [vmem:[%s4053_s11 + $0x10] sm:$0xff]  ;;  %s2009_s11 = smov [#allocation2]  }
 0x1b0   :  { %v1732_v33 = vsub.f32 %v1724_v58, %v1720_v31  ;;  %v1733_v18 = vsub.f32 %v1725_v41, %v1721_v38  ;;  %v1630_v28 = vrot.slane %v1629_v56, 4  ;;  %v1734_v29 = vmul.f32 %v1730_v13, %v1730_v13  ;;  %s1769_s8 = sshll.u32 %s2009_s11, 4  ;;  %s1770_s8 = int_to_ptr.vmem [resolvable:$true] %s1769_s8 }
 0x1b1   :  { %883 = vst.msk [vmem:[#allocation2 + $0x1] sm:$0x1] %vm882_vm2, %v881_v46  ;;  %v911_v62 = vrot.slane %v910_v17, 2  ;;  %v1735_v24 = vmul.f32 %v1731_v14, %v1731_v14  ;;  %v794_v8 = vrot.slane %v793_v15, 4  ;;  %v923_v20 = vadd.f32 %v922_v3, %v921_v37 }
 0x1b2   :  { %v1736_v57 = vmul.f32 %v1732_v33, %v1732_v33  ;;  %v1737_v30 = vmul.f32 %v1733_v18, %v1733_v18  ;;  %v1631_v40 = vadd.f32 %v1630_v28, %v1629_v56  ;;  %v1749_v21 = vmul.f32 %v1726_v32, %v1718_v16 }
 0x1b3   :  { %v912_v6 = vadd.f32 %v911_v62, %v910_v17  ;;  %v1738_v35 = vadd.f32 %v1735_v24, %v1734_v29  ;;  %v795_v19 = vadd.f32 %v794_v8, %v793_v15  ;;  %v924_v43 = vrot.slane %v923_v20, 4 }
 0x1b4   :  { %v1740_v44 = vsel %vm906_vm5, %v1737_v30, 0.0  ;;  %v1750_v39 = vmul.f32 %v1727_v11, %v1719_v12  ;;  %v1632_v60 = vrot.slane %v1631_v40, 2  ;;  %v1751_v50 = vmul.f32 %v1728_v51, %v1720_v31 }
 0x1b5   :  { %v913_v63 = vrot.slane %v912_v6, 1  ;;  %v1739_v23 = vadd.f32 %v1738_v35, %v1736_v57  ;;  %v796_v42 = vrot.slane %v795_v19, 2  ;;  %v925_v34 = vadd.f32 %v924_v43, %v923_v20 }
 0x1b6   :  { %v1752_v1 = vmul.f32 %v1729_v0, %v1721_v38  ;;  %v1753_v52 = vadd.f32 %v1750_v39, %v1749_v21  ;;  %v1633_v54 = vadd.f32 %v1632_v60, %v1631_v40  ;;  %vm800_vm11 = vcmask 16384  }
 0x1b7   :  { %v914_v47 = vadd.f32 %v913_v63, %v912_v6  ;;  %v1741_v36 = vadd.f32 %v1740_v44, %v1739_v23  ;;  %v797_v55 = vadd.f32 %v796_v42, %v795_v19  ;;  %v926_v2 = vrot.slane %v925_v34, 2 }
 0x1b8   :  { %v1754_v10 = vadd.f32 %v1753_v52, %v1751_v50  ;;  %v1755_v16 = vsel %vm906_vm5, %v1752_v1, 0.0  ;;  %v1634_v9 = vrot.slane %v1633_v54, 1 }
 0x1b9   :  { %915 = vst [vmem:[#allocation2 + $0x2] sm:$0x1] %v914_v47  ;;  %v1742_v61 = vrot.slane %v1741_v36, 4  ;;  %v798_v12 = vrot.slane %v797_v55, 1  ;;  %v927_v4 = vadd.f32 %v926_v2, %v925_v34 }
 0x1ba   :  { %v1756_v22 = vadd.f32 %v1755_v16, %v1754_v10  ;;  %v1635_v45 = vadd.f32 %v1634_v9, %v1633_v54 }
 0x1bb   :  { %v1743_v7 = vadd.f32 %v1742_v61, %v1741_v36  ;;  %v799_v59 = vadd.f32 %v798_v12, %v797_v55  ;;  %v928_v49 = vrot.slane %v927_v4, 1 }
 0x1bc   :  { %v1757_v38 = vrot.slane %v1756_v22, 4  ;;  %1636 = vst.msk [vmem:[#allocation2 + $0x4] sm:$0x1] %vm800_vm11, %v1635_v45 }
 0x1bd   :  { %v1744_v26 = vrot.slane %v1743_v7, 2  ;;  %801 = vst.msk [vmem:[#allocation2] sm:$0x1] %vm800_vm11, %v799_v59  ;;  %v929_v48 = vadd.f32 %v928_v49, %v927_v4 }
 0x1be   :  { %v1758_v27 = vadd.f32 %v1757_v38, %v1756_v22 }
 0x1bf   :  { %v1745_v53 = vadd.f32 %v1744_v26, %v1743_v7  ;;  %930 = vst [vmem:[#allocation2 + $0x3] sm:$0x1] %v929_v48 }
 0x1c0   :  { %v1759_v31 = vrot.slane %v1758_v27, 2 }
 0x1c1   :  { %v1746_v58 = vrot.slane %v1745_v53, 1 }
 0x1c2   :  { %v1760_v41 = vadd.f32 %v1759_v31, %v1758_v27 }
 0x1c3   :  { %v1747_v5 = vadd.f32 %v1746_v58, %v1745_v53 }
 0x1c4   :  { %v1761_v3 = vrot.slane %v1760_v41, 1 }
 0x1c5   :  { %1748 = vst [vmem:[#allocation2 + $0x6] sm:$0x1] %v1747_v5 }
 0x1c6   :  { %v1762_v13 = vadd.f32 %v1761_v3, %v1760_v41 }
 0x1c8   :  { %1763 = vst [vmem:[#allocation2 + $0x7] sm:$0x1] %v1762_v13 }
 0x1c9   :  { %1774 = dma.vmem_to_hbm [thread:$0]  %s1770_s8, 128, %s1772_s26, [#allocation3]  }
 0x1ca   :  { %2006 = dma.done.wait [#allocation3], 128  }
 0x1cb   :  { %2007 = vsyncadd [#allocation3], 4294967168 }
 0x1cc   :  { %1779 = vsyncpa [#allocation3], 1 }

</bundles_post_ra>
